<compile_context>
chip_gen: v7x
topology: tpu7x:2x2x1
jax: 0.10.0
libtpu: 0.0.40
codegen_flags: <defaults>
</compile_context>

<pallas_src>
import math
import functools

import jax
import jax.numpy as jnp
from jax import lax
from jax.experimental import pallas as pl
from jax.experimental.pallas import tpu as pltpu


def cross_attention_kernel(
    x_ref, y_ref,
    wq_ref, bq_ref, wk_ref, bk_ref, wv_ref, bv_ref, wo_ref, bo_ref,
    o_ref,
    k_scratch, v_scratch, attn_ref,
    *, n_heads: int, d_head: int,
):
    qi = pl.program_id(1)

    # K/V projections depend only on the batch element -> compute them once
    # (first q tile of each batch) and keep them resident in VMEM scratch for
    # all remaining q tiles. Requires the q axis to be "arbitrary" (sequential).
    @pl.when(qi == 0)
    def _():
        y = y_ref[0]                                         # (S_kv, d_cross) bf16
        k = jnp.dot(y, wk_ref[...], preferred_element_type=jnp.float32) + bk_ref[...]
        v = jnp.dot(y, wv_ref[...], preferred_element_type=jnp.float32) + bv_ref[...]
        k_scratch[...] = k.astype(k_scratch.dtype)
        v_scratch[...] = v.astype(v_scratch.dtype)

    x = x_ref[0]                                             # (block_q, d_emb) bf16
    scale = 1.0 / math.sqrt(d_head)
    # Fold 1/sqrt(d_head) into q once instead of scaling every score matrix.
    q = (jnp.dot(x, wq_ref[...], preferred_element_type=jnp.float32)
         + bq_ref[...]) * scale                              # f32 (block_q, d_emb)

    k = k_scratch[...]                                       # bf16 (S_kv, d_emb)
    v = v_scratch[...]                                       # bf16 (S_kv, d_emb)

    # Per-head attention (statically unrolled). Head results are written
    # directly into the persistent VMEM scratch -- no concatenate; the Wo
    # matmul below is fed from one dense buffer.
    # TODO(synk): if a bundle dump shows relayouts on these lane-offset slices
    # for odd d_head, project per head from weight ref views instead.
    for h in range(n_heads):
        lo = h * d_head
        hi = lo + d_head
        qh = q[:, lo:hi].astype(k.dtype)                     # (block_q, d_head)
        kh = k[:, lo:hi]                                     # (S_kv, d_head)
        vh = v[:, lo:hi]                                     # (S_kv, d_head)

        # q @ k^T without an explicit transpose: contract last dims of both.
        s = lax.dot_general(
            qh, kh, (((1,), (1,)), ((), ())),
            preferred_element_type=jnp.float32)              # (block_q, S_kv) f32

        # Softmax kept entirely in f32.
        m = jnp.max(s, axis=-1, keepdims=True)
        p = jnp.exp(s - m)
        denom = jnp.sum(p, axis=-1, keepdims=True)           # (block_q, 1)

        pv = jnp.dot(p.astype(vh.dtype), vh,
                     preferred_element_type=jnp.float32)     # (block_q, d_head)

        # EUP approx reciprocal + one Newton-Raphson step -> ~f32 accuracy.
        r = pl.reciprocal(denom, approx=True)
        r = r * (2.0 - denom * r)
        attn_ref[:, lo:hi] = pv * r

    # Output projection from one dense (block_q, d_emb) buffer.
    out = (jnp.dot(attn_ref[...].astype(wo_ref.dtype), wo_ref[...],
                   preferred_element_type=jnp.float32) + bo_ref[...])
    o_ref[0] = out.astype(o_ref.dtype)


def _vmem_limit_bytes(Skv, d_emb, d_cross, block_q, n_wbuf):
    """Rough VMEM working-set estimate -> explicit scoped-VMEM limit."""
    bf16, f32 = 2, 4
    weights = (2 * d_emb * d_emb + 2 * d_cross * d_emb) * bf16 * n_wbuf
    biases = 4 * d_emb * f32 * n_wbuf
    x_tiles = 2 * block_q * d_emb * bf16        # double-buffered x tile
    y_tiles = 2 * Skv * d_cross * bf16          # double-buffered y block
    o_tiles = 2 * block_q * d_emb * f32         # double-buffered out tile
    kv = 2 * Skv * d_emb * bf16                 # K/V scratches
    attn = block_q * d_emb * f32                # head-output scratch
    est = weights + biases + x_tiles + y_tiles + o_tiles + kv + attn
    # Headroom for compiler-internal scratch; never below the 32 MiB default,
    # capped well under 128 MiB (re-derive for v7x's 64 MiB physical VMEM).
    return int(min(max(2 * est + (4 << 20), 32 << 20), 100 << 20))


def cross_attention(x, y, params, *, n_heads: int, block_q: int = 256):
    """x: (B, S_q, d_emb), y: (B, S_kv, d_cross). Returns (B, S_q, d_emb)."""
    B, Sq, d_emb = x.shape
    _, Skv, d_cross = y.shape
    assert d_emb % n_heads == 0, "d_emb must be divisible by n_heads"
    d_head = d_emb // n_heads
    out_dtype = x.dtype

    wq, bq, wk, bk, wv, bv, wo, bo = params

    # bf16 for everything feeding the MXU; biases stay f32 (added to f32 accs).
    cdt = jnp.bfloat16
    x_c = x.astype(cdt)
    y_c = y.astype(cdt)
    wq_c, wk_c, wv_c, wo_c = (w.astype(cdt) for w in (wq, wk, wv, wo))
    bq_c, bk_c, bv_c, bo_c = (b.astype(jnp.float32) for b in (bq, bk, bv, bo))

    block_q = min(block_q, Sq)
    num_q_tiles = pl.cdiv(Sq, block_q)

    kernel = functools.partial(
        cross_attention_kernel, n_heads=n_heads, d_head=d_head
    )

    # Advisory cost estimate (K/V projections counted once per batch).
    flops = 2 * B * (Sq * d_emb * d_emb          # Q projection
                     + 2 * Skv * d_cross * d_emb  # K, V projections
                     + 2 * Sq * Skv * d_emb       # scores + P@V over all heads
                     + Sq * d_emb * d_emb)        # output projection
    transcendentals = B * n_heads * Sq * Skv      # exp in softmax
    bytes_accessed = (B * Sq * d_emb * 2 + B * Skv * d_cross * 2
                      + (2 * d_emb * d_emb + 2 * d_cross * d_emb) * 2
                      + 4 * d_emb * 4
                      + B * Sq * d_emb * jnp.dtype(out_dtype).itemsize)
    cost = pl.CostEstimate(flops=flops, transcendentals=transcendentals,
                           bytes_accessed=bytes_accessed)

    def build(single_buffer_weights: bool):
        # Weights/biases never change block index -> fetched once; with
        # Buffered(1) they are also not double-buffered (halves weight VMEM,
        # the main lever for v7x's 64 MiB VMEM at production dims).
        wkw = dict(pipeline_mode=pl.Buffered(1)) if single_buffer_weights else {}
        const = lambda shape: pl.BlockSpec(
            shape, lambda b, qi: (0,) * len(shape), **wkw)
        n_wbuf = 1 if single_buffer_weights else 2
        return pl.pallas_call(
            kernel,
            out_shape=jax.ShapeDtypeStruct((B, Sq, d_emb), out_dtype),
            grid_spec=pltpu.PrefetchScalarGridSpec(
                num_scalar_prefetch=0,
                grid=(B, num_q_tiles),
                in_specs=[
                    pl.BlockSpec((1, block_q, d_emb), lambda b, qi: (b, qi, 0)),  # x
                    pl.BlockSpec((1, Skv, d_cross), lambda b, qi: (b, 0, 0)),     # y
                    const(wq_c.shape), const(bq_c.shape),
                    const(wk_c.shape), const(bk_c.shape),
                    const(wv_c.shape), const(bv_c.shape),
                    const(wo_c.shape), const(bo_c.shape),
                ],
                out_specs=pl.BlockSpec((1, block_q, d_emb),
                                       lambda b, qi: (b, qi, 0)),
                scratch_shapes=[
                    pltpu.VMEM((Skv, d_emb), cdt),               # K cache
                    pltpu.VMEM((Skv, d_emb), cdt),               # V cache
                    pltpu.VMEM((block_q, d_emb), jnp.float32),   # head outputs
                ],
            ),
            compiler_params=pltpu.CompilerParams(
                # Batch axis parallel (megacore); q-tile axis sequential so the
                # K/V scratch written at qi == 0 stays valid across q tiles.
                dimension_semantics=("parallel", "arbitrary"),
                vmem_limit_bytes=_vmem_limit_bytes(Skv, d_emb, d_cross,
                                                   block_q, n_wbuf),
            ),
            cost_estimate=cost,
        )

    args = (x_c, y_c, wq_c, bq_c, wk_c, bk_c, wv_c, bv_c, wo_c, bo_c)
    try:
        return build(single_buffer_weights=True)(*args)
    except Exception:
        # Fallback if this JAX build rejects pipeline_mode=pl.Buffered(1);
        # semantics are identical, only weight buffering differs.
        return build(single_buffer_weights=False)(*args)


def cross_attention_ref(x, y, params, *, n_heads: int):
    """Pure-JAX f32 reference mirroring the PyTorch forward (softmax path)."""
    wq, bq, wk, bk, wv, bv, wo, bo = params
    B, Sq, d_emb = x.shape
    d_head = d_emb // n_heads

    q = x @ wq + bq
    k = y @ wk + bk
    v = y @ wv + bv

    def split(t):
        Bt, St, _ = t.shape
        return t.reshape(Bt, St, n_heads, d_head).transpose(0, 2, 1, 3)

    qh, kh, vh = split(q), split(k), split(v)
    w = jnp.einsum("bhqd,bhkd->bhqk", qh, kh) / math.sqrt(d_head)
    w = jax.nn.softmax(w, axis=-1)
    o = jnp.einsum("bhqk,bhkd->bhqd", w, vh)
    o = o.transpose(0, 2, 1, 3).reshape(B, Sq, d_emb)
    return o @ wo + bo


if __name__ == "__main__":
    # Small, module-consistent shapes.
    B, Sq, Skv = 2, 16, 8
    d_emb, d_cross, n_heads = 32, 16, 4

    key = jax.random.PRNGKey(0)
    ks = jax.random.split(key, 10)

    x = jax.random.normal(ks[0], (B, Sq, d_emb), dtype=jnp.float32)
    y = jax.random.normal(ks[1], (B, Skv, d_cross), dtype=jnp.float32)

    # Deterministic parameter init (shapes from the module's __init__).
    # Stored pre-transposed as (in, out); biases as (1, out) for 2-D layout.
    def init_linear(kw, kb, d_in, d_out):
        bound = 1.0 / math.sqrt(d_in)
        w = jax.random.uniform(kw, (d_in, d_out), jnp.float32, -bound, bound)
        b = jax.random.uniform(kb, (1, d_out), jnp.float32, -bound, bound)
        return w, b

    wq, bq = init_linear(ks[2], ks[3], d_emb, d_emb)
    wk, bk = init_linear(ks[4], ks[5], d_cross, d_emb)
    wv, bv = init_linear(ks[6], ks[7], d_cross, d_emb)
    wo, bo = init_linear(ks[8], ks[9], d_emb, d_emb)
    params = (wq, bq, wk, bk, wv, bv, wo, bo)

    out = cross_attention(x, y, params, n_heads=n_heads)
    out = jax.block_until_ready(out)

    ref = cross_attention_ref(x, y, params, n_heads=n_heads)
    assert out.shape == (B, Sq, d_emb)
    err = float(jnp.max(jnp.abs(out - ref)))
    # Tolerance reflects the bf16 MXU path (inputs/weights cast to bf16); the
    # softmax, bias adds and all accumulations are f32, and the softmax
    # reciprocal is Newton-corrected to ~f32 accuracy.
    assert jnp.allclose(out, ref, atol=3e-2, rtol=3e-2), f"max abs err = {err}"
    print("KERNEL_OK")
</pallas_src>

<mosaic_0001>
module attributes {stable_mosaic.version = 11 : i64} {
  func.func @cross_attention_kernel(%arg0: i32, %arg1: i32, %arg2: memref<1x16x32xbf16, #tpu.memory_space<vmem>>, %arg3: memref<1x8x16xbf16, #tpu.memory_space<vmem>>, %arg4: memref<32x32xbf16, #tpu.memory_space<vmem>>, %arg5: memref<1x32xf32, #tpu.memory_space<vmem>>, %arg6: memref<16x32xbf16, #tpu.memory_space<vmem>>, %arg7: memref<1x32xf32, #tpu.memory_space<vmem>>, %arg8: memref<16x32xbf16, #tpu.memory_space<vmem>>, %arg9: memref<1x32xf32, #tpu.memory_space<vmem>>, %arg10: memref<32x32xbf16, #tpu.memory_space<vmem>>, %arg11: memref<1x32xf32, #tpu.memory_space<vmem>>, %arg12: memref<1x16x32xf32, #tpu.memory_space<vmem>>, %arg13: memref<8x32xbf16, #tpu.memory_space<vmem>>, %arg14: memref<8x32xbf16, #tpu.memory_space<vmem>>, %arg15: memref<16x32xf32, #tpu.memory_space<vmem>>) attributes {dimension_semantics = [#tpu.dimension_semantics<parallel>, #tpu.dimension_semantics<arbitrary>], iteration_bounds = array<i64: 2, 1>, scalar_prefetch = 0 : i64, scratch_operands = 3 : i64, tpu.core_type = #tpu.core_type<tc>, window_params = [{transform_indices = @transform_0, window_bounds = array<i64: 1, 16, 32>}, {transform_indices = @transform_1, window_bounds = array<i64: 1, 8, 16>}, {pipeline_mode = #tpu.pipeline_mode<synchronous>, transform_indices = @transform_2, window_bounds = array<i64: 32, 32>}, {pipeline_mode = #tpu.pipeline_mode<synchronous>, transform_indices = @transform_3, window_bounds = array<i64: 1, 32>}, {pipeline_mode = #tpu.pipeline_mode<synchronous>, transform_indices = @transform_4, window_bounds = array<i64: 16, 32>}, {pipeline_mode = #tpu.pipeline_mode<synchronous>, transform_indices = @transform_5, window_bounds = array<i64: 1, 32>}, {pipeline_mode = #tpu.pipeline_mode<synchronous>, transform_indices = @transform_6, window_bounds = array<i64: 16, 32>}, {pipeline_mode = #tpu.pipeline_mode<synchronous>, transform_indices = @transform_7, window_bounds = array<i64: 1, 32>}, {pipeline_mode = #tpu.pipeline_mode<synchronous>, transform_indices = @transform_8, window_bounds = array<i64: 32, 32>}, {pipeline_mode = #tpu.pipeline_mode<synchronous>, transform_indices = @transform_9, window_bounds = array<i64: 1, 32>}, {transform_indices = @transform_10, window_bounds = array<i64: 1, 16, 32>}]} {
    %c0_i32 = arith.constant 0 : i32
    %0 = arith.cmpi eq, %arg1, %c0_i32 : i32
    %1 = arith.extui %0 : i1 to i32
    %c0_i32_0 = arith.constant 0 : i32
    %2 = arith.cmpi ne, %1, %c0_i32_0 : i32
    scf.if %2 {
      %c0_47 = arith.constant 0 : index
      %c0_48 = arith.constant 0 : index
      %c0_49 = arith.constant 0 : index
      %112 = vector.load %arg3[%c0_47, %c0_48, %c0_49] : memref<1x8x16xbf16, #tpu.memory_space<vmem>>, vector<1x8x16xbf16>
      %113 = vector.shape_cast %112 : vector<1x8x16xbf16> to vector<8x16xbf16>
      %c0_50 = arith.constant 0 : index
      %c0_51 = arith.constant 0 : index
      %114 = vector.load %arg6[%c0_50, %c0_51] : memref<16x32xbf16, #tpu.memory_space<vmem>>, vector<16x32xbf16>
      %cst_52 = arith.constant dense<0.000000e+00> : vector<8x32xf32>
      %115 = tpu.matmul %113, %114, %cst_52 {dimension_numbers = #tpu.dot_dimension_numbers<[1], [0], [0], [1], [0, 0, 1, 1], [], []>} : vector<8x16xbf16>, vector<16x32xbf16>, vector<8x32xf32> -> vector<8x32xf32>
      %c0_53 = arith.constant 0 : index
      %c0_54 = arith.constant 0 : index
      %116 = vector.load %arg7[%c0_53, %c0_54] : memref<1x32xf32, #tpu.memory_space<vmem>>, vector<1x32xf32>
      %117 = vector.broadcast %116 : vector<1x32xf32> to vector<8x32xf32>
      %118 = arith.addf %115, %117 : vector<8x32xf32>
      %c0_55 = arith.constant 0 : index
      %c0_56 = arith.constant 0 : index
      %119 = vector.load %arg8[%c0_55, %c0_56] : memref<16x32xbf16, #tpu.memory_space<vmem>>, vector<16x32xbf16>
      %cst_57 = arith.constant dense<0.000000e+00> : vector<8x32xf32>
      %120 = tpu.matmul %113, %119, %cst_57 {dimension_numbers = #tpu.dot_dimension_numbers<[1], [0], [0], [1], [0, 0, 1, 1], [], []>} : vector<8x16xbf16>, vector<16x32xbf16>, vector<8x32xf32> -> vector<8x32xf32>
      %c0_58 = arith.constant 0 : index
      %c0_59 = arith.constant 0 : index
      %121 = vector.load %arg9[%c0_58, %c0_59] : memref<1x32xf32, #tpu.memory_space<vmem>>, vector<1x32xf32>
      %122 = vector.broadcast %121 : vector<1x32xf32> to vector<8x32xf32>
      %123 = arith.addf %120, %122 : vector<8x32xf32>
      %124 = arith.truncf %118 : vector<8x32xf32> to vector<8x32xbf16>
      %c0_60 = arith.constant 0 : index
      %c0_61 = arith.constant 0 : index
      %125 = vector.load %arg13[%c0_60, %c0_61] : memref<8x32xbf16, #tpu.memory_space<vmem>>, vector<8x32xbf16>
      tpu.vector_store %arg13[%c0_60, %c0_61], %124 {strides = array<i32>} : memref<8x32xbf16, #tpu.memory_space<vmem>>, vector<8x32xbf16>,
      %126 = arith.truncf %123 : vector<8x32xf32> to vector<8x32xbf16>
      %c0_62 = arith.constant 0 : index
      %c0_63 = arith.constant 0 : index
      %127 = vector.load %arg14[%c0_62, %c0_63] : memref<8x32xbf16, #tpu.memory_space<vmem>>, vector<8x32xbf16>
      tpu.vector_store %arg14[%c0_62, %c0_63], %126 {strides = array<i32>} : memref<8x32xbf16, #tpu.memory_space<vmem>>, vector<8x32xbf16>,
    } else {
    }
    %c0 = arith.constant 0 : index
    %c0_1 = arith.constant 0 : index
    %c0_2 = arith.constant 0 : index
    %3 = vector.load %arg2[%c0, %c0_1, %c0_2] : memref<1x16x32xbf16, #tpu.memory_space<vmem>>, vector<1x16x32xbf16>
    %4 = vector.shape_cast %3 : vector<1x16x32xbf16> to vector<16x32xbf16>
    %c0_3 = arith.constant 0 : index
    %c0_4 = arith.constant 0 : index
    %5 = vector.load %arg4[%c0_3, %c0_4] : memref<32x32xbf16, #tpu.memory_space<vmem>>, vector<32x32xbf16>
    %cst = arith.constant dense<0.000000e+00> : vector<16x32xf32>
    %6 = tpu.matmul %4, %5, %cst {dimension_numbers = #tpu.dot_dimension_numbers<[1], [0], [0], [1], [0, 0, 1, 1], [], []>} : vector<16x32xbf16>, vector<32x32xbf16>, vector<16x32xf32> -> vector<16x32xf32>
    %c0_5 = arith.constant 0 : index
    %c0_6 = arith.constant 0 : index
    %7 = vector.load %arg5[%c0_5, %c0_6] : memref<1x32xf32, #tpu.memory_space<vmem>>, vector<1x32xf32>
    %8 = vector.broadcast %7 : vector<1x32xf32> to vector<16x32xf32>
    %9 = arith.addf %6, %8 : vector<16x32xf32>
    %cst_7 = arith.constant 0.353553385 : f32
    %10 = vector.broadcast %cst_7 : f32 to vector<16x32xf32>
    %11 = arith.mulf %9, %10 : vector<16x32xf32>
    %c0_8 = arith.constant 0 : index
    %c0_9 = arith.constant 0 : index
    %12 = vector.load %arg13[%c0_8, %c0_9] : memref<8x32xbf16, #tpu.memory_space<vmem>>, vector<8x32xbf16>
    %c0_10 = arith.constant 0 : index
    %c0_11 = arith.constant 0 : index
    %13 = vector.load %arg14[%c0_10, %c0_11] : memref<8x32xbf16, #tpu.memory_space<vmem>>, vector<8x32xbf16>
    %14 = vector.extract_strided_slice %11 {offsets = [0, 0], sizes = [16, 8], strides = [1, 1]} : vector<16x32xf32> to vector<16x8xf32>
    %15 = arith.truncf %14 : vector<16x8xf32> to vector<16x8xbf16>
    %16 = vector.extract_strided_slice %12 {offsets = [0, 0], sizes = [8, 8], strides = [1, 1]} : vector<8x32xbf16> to vector<8x8xbf16>
    %17 = vector.extract_strided_slice %13 {offsets = [0, 0], sizes = [8, 8], strides = [1, 1]} : vector<8x32xbf16> to vector<8x8xbf16>
    %cst_12 = arith.constant dense<0.000000e+00> : vector<16x8xf32>
    %18 = tpu.matmul %15, %16, %cst_12 {dimension_numbers = #tpu.dot_dimension_numbers<[1], [1], [0], [0], [0, 0, 1, 0], [], []>} : vector<16x8xbf16>, vector<8x8xbf16>, vector<16x8xf32> -> vector<16x8xf32>
    %cst_13 = arith.constant dense<0xFF800000> : vector<16xf32>
    %19 = vector.multi_reduction <maximumf>, %18, %cst_13 [1] : vector<16x8xf32> to vector<16xf32>
    %20 = vector.shape_cast %19 : vector<16xf32> to vector<16x1xf32>
    %21 = vector.broadcast %20 : vector<16x1xf32> to vector<16x8xf32>
    %22 = arith.subf %18, %21 : vector<16x8xf32>
    %23 = math.exp %22 : vector<16x8xf32>
    %cst_14 = arith.constant dense<0.000000e+00> : vector<16xf32>
    %24 = vector.multi_reduction <add>, %23, %cst_14 [1] : vector<16x8xf32> to vector<16xf32>
    %25 = vector.shape_cast %24 : vector<16xf32> to vector<16x1xf32>
    %26 = arith.truncf %23 : vector<16x8xf32> to vector<16x8xbf16>
    %cst_15 = arith.constant dense<0.000000e+00> : vector<16x8xf32>
    %27 = tpu.matmul %26, %17, %cst_15 {dimension_numbers = #tpu.dot_dimension_numbers<[1], [0], [0], [1], [0, 0, 1, 1], [], []>} : vector<16x8xbf16>, vector<8x8xbf16>, vector<16x8xf32> -> vector<16x8xf32>
    %28 = tpu.reciprocal %25 {approx = true} : vector<16x1xf32> -> vector<16x1xf32>
    %29 = arith.mulf %25, %28 : vector<16x1xf32>
    %cst_16 = arith.constant 2.000000e+00 : f32
    %30 = vector.broadcast %cst_16 : f32 to vector<16x1xf32>
    %31 = arith.subf %30, %29 : vector<16x1xf32>
    %32 = arith.mulf %28, %31 : vector<16x1xf32>
    %33 = vector.broadcast %32 : vector<16x1xf32> to vector<16x8xf32>
    %34 = arith.mulf %27, %33 : vector<16x8xf32>
    %c0_17 = arith.constant 0 : index
    %c0_18 = arith.constant 0 : index
    %35 = vector.load %arg15[%c0_17, %c0_18] : memref<16x32xf32, #tpu.memory_space<vmem>>, vector<16x8xf32>
    tpu.vector_store %arg15[%c0_17, %c0_18], %34 {strides = array<i32>} : memref<16x32xf32, #tpu.memory_space<vmem>>, vector<16x8xf32>,
    %36 = vector.extract_strided_slice %11 {offsets = [0, 8], sizes = [16, 8], strides = [1, 1]} : vector<16x32xf32> to vector<16x8xf32>
    %37 = arith.truncf %36 : vector<16x8xf32> to vector<16x8xbf16>
    %38 = vector.extract_strided_slice %12 {offsets = [0, 8], sizes = [8, 8], strides = [1, 1]} : vector<8x32xbf16> to vector<8x8xbf16>
    %39 = vector.extract_strided_slice %13 {offsets = [0, 8], sizes = [8, 8], strides = [1, 1]} : vector<8x32xbf16> to vector<8x8xbf16>
    %cst_19 = arith.constant dense<0.000000e+00> : vector<16x8xf32>
    %40 = tpu.matmul %37, %38, %cst_19 {dimension_numbers = #tpu.dot_dimension_numbers<[1], [1], [0], [0], [0, 0, 1, 0], [], []>} : vector<16x8xbf16>, vector<8x8xbf16>, vector<16x8xf32> -> vector<16x8xf32>
    %cst_20 = arith.constant dense<0xFF800000> : vector<16xf32>
    %41 = vector.multi_reduction <maximumf>, %40, %cst_20 [1] : vector<16x8xf32> to vector<16xf32>
    %42 = vector.shape_cast %41 : vector<16xf32> to vector<16x1xf32>
    %43 = vector.broadcast %42 : vector<16x1xf32> to vector<16x8xf32>
    %44 = arith.subf %40, %43 : vector<16x8xf32>
    %45 = math.exp %44 : vector<16x8xf32>
    %cst_21 = arith.constant dense<0.000000e+00> : vector<16xf32>
    %46 = vector.multi_reduction <add>, %45, %cst_21 [1] : vector<16x8xf32> to vector<16xf32>
    %47 = vector.shape_cast %46 : vector<16xf32> to vector<16x1xf32>
    %48 = arith.truncf %45 : vector<16x8xf32> to vector<16x8xbf16>
    %cst_22 = arith.constant dense<0.000000e+00> : vector<16x8xf32>
    %49 = tpu.matmul %48, %39, %cst_22 {dimension_numbers = #tpu.dot_dimension_numbers<[1], [0], [0], [1], [0, 0, 1, 1], [], []>} : vector<16x8xbf16>, vector<8x8xbf16>, vector<16x8xf32> -> vector<16x8xf32>
    %50 = tpu.reciprocal %47 {approx = true} : vector<16x1xf32> -> vector<16x1xf32>
    %51 = arith.mulf %47, %50 : vector<16x1xf32>
    %cst_23 = arith.constant 2.000000e+00 : f32
    %52 = vector.broadcast %cst_23 : f32 to vector<16x1xf32>
    %53 = arith.subf %52, %51 : vector<16x1xf32>
    %54 = arith.mulf %50, %53 : vector<16x1xf32>
    %55 = vector.broadcast %54 : vector<16x1xf32> to vector<16x8xf32>
    %56 = arith.mulf %49, %55 : vector<16x8xf32>
    %c0_24 = arith.constant 0 : index
    %c8 = arith.constant 8 : index
    %57 = vector.load %arg15[%c0_24, %c8] : memref<16x32xf32, #tpu.memory_space<vmem>>, vector<16x8xf32>
    tpu.vector_store %arg15[%c0_24, %c8], %56 {strides = array<i32>} : memref<16x32xf32, #tpu.memory_space<vmem>>, vector<16x8xf32>,
    %58 = vector.extract_strided_slice %11 {offsets = [0, 16], sizes = [16, 8], strides = [1, 1]} : vector<16x32xf32> to vector<16x8xf32>
    %59 = arith.truncf %58 : vector<16x8xf32> to vector<16x8xbf16>
    %60 = vector.extract_strided_slice %12 {offsets = [0, 16], sizes = [8, 8], strides = [1, 1]} : vector<8x32xbf16> to vector<8x8xbf16>
    %61 = vector.extract_strided_slice %13 {offsets = [0, 16], sizes = [8, 8], strides = [1, 1]} : vector<8x32xbf16> to vector<8x8xbf16>
    %cst_25 = arith.constant dense<0.000000e+00> : vector<16x8xf32>
    %62 = tpu.matmul %59, %60, %cst_25 {dimension_numbers = #tpu.dot_dimension_numbers<[1], [1], [0], [0], [0, 0, 1, 0], [], []>} : vector<16x8xbf16>, vector<8x8xbf16>, vector<16x8xf32> -> vector<16x8xf32>
    %cst_26 = arith.constant dense<0xFF800000> : vector<16xf32>
    %63 = vector.multi_reduction <maximumf>, %62, %cst_26 [1] : vector<16x8xf32> to vector<16xf32>
    %64 = vector.shape_cast %63 : vector<16xf32> to vector<16x1xf32>
    %65 = vector.broadcast %64 : vector<16x1xf32> to vector<16x8xf32>
    %66 = arith.subf %62, %65 : vector<16x8xf32>
    %67 = math.exp %66 : vector<16x8xf32>
    %cst_27 = arith.constant dense<0.000000e+00> : vector<16xf32>
    %68 = vector.multi_reduction <add>, %67, %cst_27 [1] : vector<16x8xf32> to vector<16xf32>
    %69 = vector.shape_cast %68 : vector<16xf32> to vector<16x1xf32>
    %70 = arith.truncf %67 : vector<16x8xf32> to vector<16x8xbf16>
    %cst_28 = arith.constant dense<0.000000e+00> : vector<16x8xf32>
    %71 = tpu.matmul %70, %61, %cst_28 {dimension_numbers = #tpu.dot_dimension_numbers<[1], [0], [0], [1], [0, 0, 1, 1], [], []>} : vector<16x8xbf16>, vector<8x8xbf16>, vector<16x8xf32> -> vector<16x8xf32>
    %72 = tpu.reciprocal %69 {approx = true} : vector<16x1xf32> -> vector<16x1xf32>
    %73 = arith.mulf %69, %72 : vector<16x1xf32>
    %cst_29 = arith.constant 2.000000e+00 : f32
    %74 = vector.broadcast %cst_29 : f32 to vector<16x1xf32>
    %75 = arith.subf %74, %73 : vector<16x1xf32>
    %76 = arith.mulf %72, %75 : vector<16x1xf32>
    %77 = vector.broadcast %76 : vector<16x1xf32> to vector<16x8xf32>
    %78 = arith.mulf %71, %77 : vector<16x8xf32>
    %c0_30 = arith.constant 0 : index
    %c16 = arith.constant 16 : index
    %79 = vector.load %arg15[%c0_30, %c16] : memref<16x32xf32, #tpu.memory_space<vmem>>, vector<16x8xf32>
    tpu.vector_store %arg15[%c0_30, %c16], %78 {strides = array<i32>} : memref<16x32xf32, #tpu.memory_space<vmem>>, vector<16x8xf32>,
    %80 = vector.extract_strided_slice %11 {offsets = [0, 24], sizes = [16, 8], strides = [1, 1]} : vector<16x32xf32> to vector<16x8xf32>
    %81 = arith.truncf %80 : vector<16x8xf32> to vector<16x8xbf16>
    %82 = vector.extract_strided_slice %12 {offsets = [0, 24], sizes = [8, 8], strides = [1, 1]} : vector<8x32xbf16> to vector<8x8xbf16>
    %83 = vector.extract_strided_slice %13 {offsets = [0, 24], sizes = [8, 8], strides = [1, 1]} : vector<8x32xbf16> to vector<8x8xbf16>
    %cst_31 = arith.constant dense<0.000000e+00> : vector<16x8xf32>
    %84 = tpu.matmul %81, %82, %cst_31 {dimension_numbers = #tpu.dot_dimension_numbers<[1], [1], [0], [0], [0, 0, 1, 0], [], []>} : vector<16x8xbf16>, vector<8x8xbf16>, vector<16x8xf32> -> vector<16x8xf32>
    %cst_32 = arith.constant dense<0xFF800000> : vector<16xf32>
    %85 = vector.multi_reduction <maximumf>, %84, %cst_32 [1] : vector<16x8xf32> to vector<16xf32>
    %86 = vector.shape_cast %85 : vector<16xf32> to vector<16x1xf32>
    %87 = vector.broadcast %86 : vector<16x1xf32> to vector<16x8xf32>
    %88 = arith.subf %84, %87 : vector<16x8xf32>
    %89 = math.exp %88 : vector<16x8xf32>
    %cst_33 = arith.constant dense<0.000000e+00> : vector<16xf32>
    %90 = vector.multi_reduction <add>, %89, %cst_33 [1] : vector<16x8xf32> to vector<16xf32>
    %91 = vector.shape_cast %90 : vector<16xf32> to vector<16x1xf32>
    %92 = arith.truncf %89 : vector<16x8xf32> to vector<16x8xbf16>
    %cst_34 = arith.constant dense<0.000000e+00> : vector<16x8xf32>
    %93 = tpu.matmul %92, %83, %cst_34 {dimension_numbers = #tpu.dot_dimension_numbers<[1], [0], [0], [1], [0, 0, 1, 1], [], []>} : vector<16x8xbf16>, vector<8x8xbf16>, vector<16x8xf32> -> vector<16x8xf32>
    %94 = tpu.reciprocal %91 {approx = true} : vector<16x1xf32> -> vector<16x1xf32>
    %95 = arith.mulf %91, %94 : vector<16x1xf32>
    %cst_35 = arith.constant 2.000000e+00 : f32
    %96 = vector.broadcast %cst_35 : f32 to vector<16x1xf32>
    %97 = arith.subf %96, %95 : vector<16x1xf32>
    %98 = arith.mulf %94, %97 : vector<16x1xf32>
    %99 = vector.broadcast %98 : vector<16x1xf32> to vector<16x8xf32>
    %100 = arith.mulf %93, %99 : vector<16x8xf32>
    %c0_36 = arith.constant 0 : index
    %c24 = arith.constant 24 : index
    %101 = vector.load %arg15[%c0_36, %c24] : memref<16x32xf32, #tpu.memory_space<vmem>>, vector<16x8xf32>
    tpu.vector_store %arg15[%c0_36, %c24], %100 {strides = array<i32>} : memref<16x32xf32, #tpu.memory_space<vmem>>, vector<16x8xf32>,
    %c0_37 = arith.constant 0 : index
    %c0_38 = arith.constant 0 : index
    %102 = vector.load %arg15[%c0_37, %c0_38] : memref<16x32xf32, #tpu.memory_space<vmem>>, vector<16x32xf32>
    %103 = arith.truncf %102 : vector<16x32xf32> to vector<16x32xbf16>
    %c0_39 = arith.constant 0 : index
    %c0_40 = arith.constant 0 : index
    %104 = vector.load %arg10[%c0_39, %c0_40] : memref<32x32xbf16, #tpu.memory_space<vmem>>, vector<32x32xbf16>
    %cst_41 = arith.constant dense<0.000000e+00> : vector<16x32xf32>
    %105 = tpu.matmul %103, %104, %cst_41 {dimension_numbers = #tpu.dot_dimension_numbers<[1], [0], [0], [1], [0, 0, 1, 1], [], []>} : vector<16x32xbf16>, vector<32x32xbf16>, vector<16x32xf32> -> vector<16x32xf32>
    %c0_42 = arith.constant 0 : index
    %c0_43 = arith.constant 0 : index
    %106 = vector.load %arg11[%c0_42, %c0_43] : memref<1x32xf32, #tpu.memory_space<vmem>>, vector<1x32xf32>
    %107 = vector.broadcast %106 : vector<1x32xf32> to vector<16x32xf32>
    %108 = arith.addf %105, %107 : vector<16x32xf32>
    %c0_44 = arith.constant 0 : index
    %c0_45 = arith.constant 0 : index
    %c0_46 = arith.constant 0 : index
    %109 = vector.load %arg12[%c0_44, %c0_45, %c0_46] : memref<1x16x32xf32, #tpu.memory_space<vmem>>, vector<1x16x32xf32>
    %110 = vector.shape_cast %109 : vector<1x16x32xf32> to vector<16x32xf32>
    %111 = vector.shape_cast %108 : vector<16x32xf32> to vector<1x16x32xf32>
    tpu.vector_store %arg12[%c0_44, %c0_45, %c0_46], %111 {strides = array<i32>} : memref<1x16x32xf32, #tpu.memory_space<vmem>>, vector<1x16x32xf32>,
    return
  }
  func.func @transform_0(%arg0: i32, %arg1: i32) -> (i32, i32, i32) {
    %c0_i32 = arith.constant 0 : i32
    %c0_i32_0 = arith.constant 0 : i32
    return %arg0, %arg1, %c0_i32 : i32, i32, i32
  }
  func.func @transform_1(%arg0: i32, %arg1: i32) -> (i32, i32, i32) {
    %c0_i32 = arith.constant 0 : i32
    %c0_i32_0 = arith.constant 0 : i32
    %c0_i32_1 = arith.constant 0 : i32
    return %arg0, %c0_i32, %c0_i32_0 : i32, i32, i32
  }
  func.func @transform_2(%arg0: i32, %arg1: i32) -> (i32, i32) {
    %c0_i32 = arith.constant 0 : i32
    %c0_i32_0 = arith.constant 0 : i32
    %c0_i32_1 = arith.constant 0 : i32
    return %c0_i32, %c0_i32_0 : i32, i32
  }
  func.func @transform_3(%arg0: i32, %arg1: i32) -> (i32, i32) {
    %c0_i32 = arith.constant 0 : i32
    %c0_i32_0 = arith.constant 0 : i32
    %c0_i32_1 = arith.constant 0 : i32
    return %c0_i32, %c0_i32_0 : i32, i32
  }
  func.func @transform_4(%arg0: i32, %arg1: i32) -> (i32, i32) {
    %c0_i32 = arith.constant 0 : i32
    %c0_i32_0 = arith.constant 0 : i32
    %c0_i32_1 = arith.constant 0 : i32
    return %c0_i32, %c0_i32_0 : i32, i32
  }
  func.func @transform_5(%arg0: i32, %arg1: i32) -> (i32, i32) {
    %c0_i32 = arith.constant 0 : i32
    %c0_i32_0 = arith.constant 0 : i32
    %c0_i32_1 = arith.constant 0 : i32
    return %c0_i32, %c0_i32_0 : i32, i32
  }
  func.func @transform_6(%arg0: i32, %arg1: i32) -> (i32, i32) {
    %c0_i32 = arith.constant 0 : i32
    %c0_i32_0 = arith.constant 0 : i32
    %c0_i32_1 = arith.constant 0 : i32
    return %c0_i32, %c0_i32_0 : i32, i32
  }
  func.func @transform_7(%arg0: i32, %arg1: i32) -> (i32, i32) {
    %c0_i32 = arith.constant 0 : i32
    %c0_i32_0 = arith.constant 0 : i32
    %c0_i32_1 = arith.constant 0 : i32
    return %c0_i32, %c0_i32_0 : i32, i32
  }
  func.func @transform_8(%arg0: i32, %arg1: i32) -> (i32, i32) {
    %c0_i32 = arith.constant 0 : i32
    %c0_i32_0 = arith.constant 0 : i32
    %c0_i32_1 = arith.constant 0 : i32
    return %c0_i32, %c0_i32_0 : i32, i32
  }
  func.func @transform_9(%arg0: i32, %arg1: i32) -> (i32, i32) {
    %c0_i32 = arith.constant 0 : i32
    %c0_i32_0 = arith.constant 0 : i32
    %c0_i32_1 = arith.constant 0 : i32
    return %c0_i32, %c0_i32_0 : i32, i32
  }
  func.func @transform_10(%arg0: i32, %arg1: i32) -> (i32, i32, i32) {
    %c0_i32 = arith.constant 0 : i32
    %c0_i32_0 = arith.constant 0 : i32
    return %arg0, %arg1, %c0_i32 : i32, i32, i32
  }
}

module attributes {stable_mosaic.version = 11 : i64} {
  func.func @cross_attention_kernel(%arg0: i32, %arg1: i32, %arg2: memref<1x16x32xbf16, #tpu.memory_space<vmem>>, %arg3: memref<1x8x16xbf16, #tpu.memory_space<vmem>>, %arg4: memref<32x32xbf16, #tpu.memory_space<vmem>>, %arg5: memref<1x32xf32, #tpu.memory_space<vmem>>, %arg6: memref<16x32xbf16, #tpu.memory_space<vmem>>, %arg7: memref<1x32xf32, #tpu.memory_space<vmem>>, %arg8: memref<16x32xbf16, #tpu.memory_space<vmem>>, %arg9: memref<1x32xf32, #tpu.memory_space<vmem>>, %arg10: memref<32x32xbf16, #tpu.memory_space<vmem>>, %arg11: memref<1x32xf32, #tpu.memory_space<vmem>>, %arg12: memref<1x16x32xf32, #tpu.memory_space<vmem>>, %arg13: memref<8x32xbf16, #tpu.memory_space<vmem>>, %arg14: memref<8x32xbf16, #tpu.memory_space<vmem>>, %arg15: memref<16x32xf32, #tpu.memory_space<vmem>>) attributes {dimension_semantics = [#tpu.dimension_semantics<parallel>, #tpu.dimension_semantics<arbitrary>], iteration_bounds = array<i64: 2, 1>, scalar_prefetch = 0 : i64, scratch_operands = 3 : i64, tpu.core_type = #tpu.core_type<tc>, window_params = [{transform_indices = @transform_0, window_bounds = array<i64: 1, 16, 32>}, {transform_indices = @transform_1, window_bounds = array<i64: 1, 8, 16>}, {pipeline_mode = #tpu.pipeline_mode<synchronous>, transform_indices = @transform_2, window_bounds = array<i64: 32, 32>}, {pipeline_mode = #tpu.pipeline_mode<synchronous>, transform_indices = @transform_3, window_bounds = array<i64: 1, 32>}, {pipeline_mode = #tpu.pipeline_mode<synchronous>, transform_indices = @transform_4, window_bounds = array<i64: 16, 32>}, {pipeline_mode = #tpu.pipeline_mode<synchronous>, transform_indices = @transform_5, window_bounds = array<i64: 1, 32>}, {pipeline_mode = #tpu.pipeline_mode<synchronous>, transform_indices = @transform_6, window_bounds = array<i64: 16, 32>}, {pipeline_mode = #tpu.pipeline_mode<synchronous>, transform_indices = @transform_7, window_bounds = array<i64: 1, 32>}, {pipeline_mode = #tpu.pipeline_mode<synchronous>, transform_indices = @transform_8, window_bounds = array<i64: 32, 32>}, {pipeline_mode = #tpu.pipeline_mode<synchronous>, transform_indices = @transform_9, window_bounds = array<i64: 1, 32>}, {transform_indices = @transform_10, window_bounds = array<i64: 1, 16, 32>}]} {
    %c0_i32 = arith.constant 0 : i32
    %0 = arith.cmpi eq, %arg1, %c0_i32 : i32
    %1 = arith.extui %0 : i1 to i32
    %c0_i32_0 = arith.constant 0 : i32
    %2 = arith.cmpi ne, %1, %c0_i32_0 : i32
    scf.if %2 {
      %c0_47 = arith.constant 0 : index
      %c0_48 = arith.constant 0 : index
      %c0_49 = arith.constant 0 : index
      %112 = vector.load %arg3[%c0_47, %c0_48, %c0_49] : memref<1x8x16xbf16, #tpu.memory_space<vmem>>, vector<1x8x16xbf16>
      %113 = vector.shape_cast %112 : vector<1x8x16xbf16> to vector<8x16xbf16>
      %c0_50 = arith.constant 0 : index
      %c0_51 = arith.constant 0 : index
      %114 = vector.load %arg6[%c0_50, %c0_51] : memref<16x32xbf16, #tpu.memory_space<vmem>>, vector<16x32xbf16>
      %cst_52 = arith.constant dense<0.000000e+00> : vector<8x32xf32>
      %115 = tpu.matmul %113, %114, %cst_52 {dimension_numbers = #tpu.dot_dimension_numbers<[1], [0], [0], [1], [0, 0, 1, 1], [], []>} : vector<8x16xbf16>, vector<16x32xbf16>, vector<8x32xf32> -> vector<8x32xf32>
      %c0_53 = arith.constant 0 : index
      %c0_54 = arith.constant 0 : index
      %116 = vector.load %arg7[%c0_53, %c0_54] : memref<1x32xf32, #tpu.memory_space<vmem>>, vector<1x32xf32>
      %117 = vector.broadcast %116 : vector<1x32xf32> to vector<8x32xf32>
      %118 = arith.addf %115, %117 : vector<8x32xf32>
      %c0_55 = arith.constant 0 : index
      %c0_56 = arith.constant 0 : index
      %119 = vector.load %arg8[%c0_55, %c0_56] : memref<16x32xbf16, #tpu.memory_space<vmem>>, vector<16x32xbf16>
      %cst_57 = arith.constant dense<0.000000e+00> : vector<8x32xf32>
      %120 = tpu.matmul %113, %119, %cst_57 {dimension_numbers = #tpu.dot_dimension_numbers<[1], [0], [0], [1], [0, 0, 1, 1], [], []>} : vector<8x16xbf16>, vector<16x32xbf16>, vector<8x32xf32> -> vector<8x32xf32>
      %c0_58 = arith.constant 0 : index
      %c0_59 = arith.constant 0 : index
      %121 = vector.load %arg9[%c0_58, %c0_59] : memref<1x32xf32, #tpu.memory_space<vmem>>, vector<1x32xf32>
      %122 = vector.broadcast %121 : vector<1x32xf32> to vector<8x32xf32>
      %123 = arith.addf %120, %122 : vector<8x32xf32>
      %124 = arith.truncf %118 : vector<8x32xf32> to vector<8x32xbf16>
      %c0_60 = arith.constant 0 : index
      %c0_61 = arith.constant 0 : index
      %125 = vector.load %arg13[%c0_60, %c0_61] : memref<8x32xbf16, #tpu.memory_space<vmem>>, vector<8x32xbf16>
      tpu.vector_store %arg13[%c0_60, %c0_61], %124 {strides = array<i32>} : memref<8x32xbf16, #tpu.memory_space<vmem>>, vector<8x32xbf16>,
      %126 = arith.truncf %123 : vector<8x32xf32> to vector<8x32xbf16>
      %c0_62 = arith.constant 0 : index
      %c0_63 = arith.constant 0 : index
      %127 = vector.load %arg14[%c0_62, %c0_63] : memref<8x32xbf16, #tpu.memory_space<vmem>>, vector<8x32xbf16>
      tpu.vector_store %arg14[%c0_62, %c0_63], %126 {strides = array<i32>} : memref<8x32xbf16, #tpu.memory_space<vmem>>, vector<8x32xbf16>,
    } else {
    }
    %c0 = arith.constant 0 : index
    %c0_1 = arith.constant 0 : index
    %c0_2 = arith.constant 0 : index
    %3 = vector.load %arg2[%c0, %c0_1, %c0_2] : memref<1x16x32xbf16, #tpu.memory_space<vmem>>, vector<1x16x32xbf16>
    %4 = vector.shape_cast %3 : vector<1x16x32xbf16> to vector<16x32xbf16>
    %c0_3 = arith.constant 0 : index
    %c0_4 = arith.constant 0 : index
    %5 = vector.load %arg4[%c0_3, %c0_4] : memref<32x32xbf16, #tpu.memory_space<vmem>>, vector<32x32xbf16>
    %cst = arith.constant dense<0.000000e+00> : vector<16x32xf32>
    %6 = tpu.matmul %4, %5, %cst {dimension_numbers = #tpu.dot_dimension_numbers<[1], [0], [0], [1], [0, 0, 1, 1], [], []>} : vector<16x32xbf16>, vector<32x32xbf16>, vector<16x32xf32> -> vector<16x32xf32>
    %c0_5 = arith.constant 0 : index
    %c0_6 = arith.constant 0 : index
    %7 = vector.load %arg5[%c0_5, %c0_6] : memref<1x32xf32, #tpu.memory_space<vmem>>, vector<1x32xf32>
    %8 = vector.broadcast %7 : vector<1x32xf32> to vector<16x32xf32>
    %9 = arith.addf %6, %8 : vector<16x32xf32>
    %cst_7 = arith.constant 0.353553385 : f32
    %10 = vector.broadcast %cst_7 : f32 to vector<16x32xf32>
    %11 = arith.mulf %9, %10 : vector<16x32xf32>
    %c0_8 = arith.constant 0 : index
    %c0_9 = arith.constant 0 : index
    %12 = vector.load %arg13[%c0_8, %c0_9] : memref<8x32xbf16, #tpu.memory_space<vmem>>, vector<8x32xbf16>
    %c0_10 = arith.constant 0 : index
    %c0_11 = arith.constant 0 : index
    %13 = vector.load %arg14[%c0_10, %c0_11] : memref<8x32xbf16, #tpu.memory_space<vmem>>, vector<8x32xbf16>
    %14 = vector.extract_strided_slice %11 {offsets = [0, 0], sizes = [16, 8], strides = [1, 1]} : vector<16x32xf32> to vector<16x8xf32>
    %15 = arith.truncf %14 : vector<16x8xf32> to vector<16x8xbf16>
    %16 = vector.extract_strided_slice %12 {offsets = [0, 0], sizes = [8, 8], strides = [1, 1]} : vector<8x32xbf16> to vector<8x8xbf16>
    %17 = vector.extract_strided_slice %13 {offsets = [0, 0], sizes = [8, 8], strides = [1, 1]} : vector<8x32xbf16> to vector<8x8xbf16>
    %cst_12 = arith.constant dense<0.000000e+00> : vector<16x8xf32>
    %18 = tpu.matmul %15, %16, %cst_12 {dimension_numbers = #tpu.dot_dimension_numbers<[1], [1], [0], [0], [0, 0, 1, 0], [], []>} : vector<16x8xbf16>, vector<8x8xbf16>, vector<16x8xf32> -> vector<16x8xf32>
    %cst_13 = arith.constant dense<0xFF800000> : vector<16xf32>
    %19 = vector.multi_reduction <maximumf>, %18, %cst_13 [1] : vector<16x8xf32> to vector<16xf32>
    %20 = vector.shape_cast %19 : vector<16xf32> to vector<16x1xf32>
    %21 = vector.broadcast %20 : vector<16x1xf32> to vector<16x8xf32>
    %22 = arith.subf %18, %21 : vector<16x8xf32>
    %23 = math.exp %22 : vector<16x8xf32>
    %cst_14 = arith.constant dense<0.000000e+00> : vector<16xf32>
    %24 = vector.multi_reduction <add>, %23, %cst_14 [1] : vector<16x8xf32> to vector<16xf32>
    %25 = vector.shape_cast %24 : vector<16xf32> to vector<16x1xf32>
    %26 = arith.truncf %23 : vector<16x8xf32> to vector<16x8xbf16>
    %cst_15 = arith.constant dense<0.000000e+00> : vector<16x8xf32>
    %27 = tpu.matmul %26, %17, %cst_15 {dimension_numbers = #tpu.dot_dimension_numbers<[1], [0], [0], [1], [0, 0, 1, 1], [], []>} : vector<16x8xbf16>, vector<8x8xbf16>, vector<16x8xf32> -> vector<16x8xf32>
    %28 = tpu.reciprocal %25 {approx = true} : vector<16x1xf32> -> vector<16x1xf32>
    %29 = arith.mulf %25, %28 : vector<16x1xf32>
    %cst_16 = arith.constant 2.000000e+00 : f32
    %30 = vector.broadcast %cst_16 : f32 to vector<16x1xf32>
    %31 = arith.subf %30, %29 : vector<16x1xf32>
    %32 = arith.mulf %28, %31 : vector<16x1xf32>
    %33 = vector.broadcast %32 : vector<16x1xf32> to vector<16x8xf32>
    %34 = arith.mulf %27, %33 : vector<16x8xf32>
    %c0_17 = arith.constant 0 : index
    %c0_18 = arith.constant 0 : index
    %35 = vector.load %arg15[%c0_17, %c0_18] : memref<16x32xf32, #tpu.memory_space<vmem>>, vector<16x8xf32>
    tpu.vector_store %arg15[%c0_17, %c0_18], %34 {strides = array<i32>} : memref<16x32xf32, #tpu.memory_space<vmem>>, vector<16x8xf32>,
    %36 = vector.extract_strided_slice %11 {offsets = [0, 8], sizes = [16, 8], strides = [1, 1]} : vector<16x32xf32> to vector<16x8xf32>
    %37 = arith.truncf %36 : vector<16x8xf32> to vector<16x8xbf16>
    %38 = vector.extract_strided_slice %12 {offsets = [0, 8], sizes = [8, 8], strides = [1, 1]} : vector<8x32xbf16> to vector<8x8xbf16>
    %39 = vector.extract_strided_slice %13 {offsets = [0, 8], sizes = [8, 8], strides = [1, 1]} : vector<8x32xbf16> to vector<8x8xbf16>
    %cst_19 = arith.constant dense<0.000000e+00> : vector<16x8xf32>
    %40 = tpu.matmul %37, %38, %cst_19 {dimension_numbers = #tpu.dot_dimension_numbers<[1], [1], [0], [0], [0, 0, 1, 0], [], []>} : vector<16x8xbf16>, vector<8x8xbf16>, vector<16x8xf32> -> vector<16x8xf32>
    %cst_20 = arith.constant dense<0xFF800000> : vector<16xf32>
    %41 = vector.multi_reduction <maximumf>, %40, %cst_20 [1] : vector<16x8xf32> to vector<16xf32>
    %42 = vector.shape_cast %41 : vector<16xf32> to vector<16x1xf32>
    %43 = vector.broadcast %42 : vector<16x1xf32> to vector<16x8xf32>
    %44 = arith.subf %40, %43 : vector<16x8xf32>
    %45 = math.exp %44 : vector<16x8xf32>
    %cst_21 = arith.constant dense<0.000000e+00> : vector<16xf32>
    %46 = vector.multi_reduction <add>, %45, %cst_21 [1] : vector<16x8xf32> to vector<16xf32>
    %47 = vector.shape_cast %46 : vector<16xf32> to vector<16x1xf32>
    %48 = arith.truncf %45 : vector<16x8xf32> to vector<16x8xbf16>
    %cst_22 = arith.constant dense<0.000000e+00> : vector<16x8xf32>
    %49 = tpu.matmul %48, %39, %cst_22 {dimension_numbers = #tpu.dot_dimension_numbers<[1], [0], [0], [1], [0, 0, 1, 1], [], []>} : vector<16x8xbf16>, vector<8x8xbf16>, vector<16x8xf32> -> vector<16x8xf32>
    %50 = tpu.reciprocal %47 {approx = true} : vector<16x1xf32> -> vector<16x1xf32>
    %51 = arith.mulf %47, %50 : vector<16x1xf32>
    %cst_23 = arith.constant 2.000000e+00 : f32
    %52 = vector.broadcast %cst_23 : f32 to vector<16x1xf32>
    %53 = arith.subf %52, %51 : vector<16x1xf32>
    %54 = arith.mulf %50, %53 : vector<16x1xf32>
    %55 = vector.broadcast %54 : vector<16x1xf32> to vector<16x8xf32>
    %56 = arith.mulf %49, %55 : vector<16x8xf32>
    %c0_24 = arith.constant 0 : index
    %c8 = arith.constant 8 : index
    %57 = vector.load %arg15[%c0_24, %c8] : memref<16x32xf32, #tpu.memory_space<vmem>>, vector<16x8xf32>
    tpu.vector_store %arg15[%c0_24, %c8], %56 {strides = array<i32>} : memref<16x32xf32, #tpu.memory_space<vmem>>, vector<16x8xf32>,
    %58 = vector.extract_strided_slice %11 {offsets = [0, 16], sizes = [16, 8], strides = [1, 1]} : vector<16x32xf32> to vector<16x8xf32>
    %59 = arith.truncf %58 : vector<16x8xf32> to vector<16x8xbf16>
    %60 = vector.extract_strided_slice %12 {offsets = [0, 16], sizes = [8, 8], strides = [1, 1]} : vector<8x32xbf16> to vector<8x8xbf16>
    %61 = vector.extract_strided_slice %13 {offsets = [0, 16], sizes = [8, 8], strides = [1, 1]} : vector<8x32xbf16> to vector<8x8xbf16>
    %cst_25 = arith.constant dense<0.000000e+00> : vector<16x8xf32>
    %62 = tpu.matmul %59, %60, %cst_25 {dimension_numbers = #tpu.dot_dimension_numbers<[1], [1], [0], [0], [0, 0, 1, 0], [], []>} : vector<16x8xbf16>, vector<8x8xbf16>, vector<16x8xf32> -> vector<16x8xf32>
    %cst_26 = arith.constant dense<0xFF800000> : vector<16xf32>
    %63 = vector.multi_reduction <maximumf>, %62, %cst_26 [1] : vector<16x8xf32> to vector<16xf32>
    %64 = vector.shape_cast %63 : vector<16xf32> to vector<16x1xf32>
    %65 = vector.broadcast %64 : vector<16x1xf32> to vector<16x8xf32>
    %66 = arith.subf %62, %65 : vector<16x8xf32>
    %67 = math.exp %66 : vector<16x8xf32>
    %cst_27 = arith.constant dense<0.000000e+00> : vector<16xf32>
    %68 = vector.multi_reduction <add>, %67, %cst_27 [1] : vector<16x8xf32> to vector<16xf32>
    %69 = vector.shape_cast %68 : vector<16xf32> to vector<16x1xf32>
    %70 = arith.truncf %67 : vector<16x8xf32> to vector<16x8xbf16>
    %cst_28 = arith.constant dense<0.000000e+00> : vector<16x8xf32>
    %71 = tpu.matmul %70, %61, %cst_28 {dimension_numbers = #tpu.dot_dimension_numbers<[1], [0], [0], [1], [0, 0, 1, 1], [], []>} : vector<16x8xbf16>, vector<8x8xbf16>, vector<16x8xf32> -> vector<16x8xf32>
    %72 = tpu.reciprocal %69 {approx = true} : vector<16x1xf32> -> vector<16x1xf32>
    %73 = arith.mulf %69, %72 : vector<16x1xf32>
    %cst_29 = arith.constant 2.000000e+00 : f32
    %74 = vector.broadcast %cst_29 : f32 to vector<16x1xf32>
    %75 = arith.subf %74, %73 : vector<16x1xf32>
    %76 = arith.mulf %72, %75 : vector<16x1xf32>
    %77 = vector.broadcast %76 : vector<16x1xf32> to vector<16x8xf32>
    %78 = arith.mulf %71, %77 : vector<16x8xf32>
    %c0_30 = arith.constant 0 : index
    %c16 = arith.constant 16 : index
    %79 = vector.load %arg15[%c0_30, %c16] : memref<16x32xf32, #tpu.memory_space<vmem>>, vector<16x8xf32>
    tpu.vector_store %arg15[%c0_30, %c16], %78 {strides = array<i32>} : memref<16x32xf32, #tpu.memory_space<vmem>>, vector<16x8xf32>,
    %80 = vector.extract_strided_slice %11 {offsets = [0, 24], sizes = [16, 8], strides = [1, 1]} : vector<16x32xf32> to vector<16x8xf32>
    %81 = arith.truncf %80 : vector<16x8xf32> to vector<16x8xbf16>
    %82 = vector.extract_strided_slice %12 {offsets = [0, 24], sizes = [8, 8], strides = [1, 1]} : vector<8x32xbf16> to vector<8x8xbf16>
    %83 = vector.extract_strided_slice %13 {offsets = [0, 24], sizes = [8, 8], strides = [1, 1]} : vector<8x32xbf16> to vector<8x8xbf16>
    %cst_31 = arith.constant dense<0.000000e+00> : vector<16x8xf32>
    %84 = tpu.matmul %81, %82, %cst_31 {dimension_numbers = #tpu.dot_dimension_numbers<[1], [1], [0], [0], [0, 0, 1, 0], [], []>} : vector<16x8xbf16>, vector<8x8xbf16>, vector<16x8xf32> -> vector<16x8xf32>
    %cst_32 = arith.constant dense<0xFF800000> : vector<16xf32>
    %85 = vector.multi_reduction <maximumf>, %84, %cst_32 [1] : vector<16x8xf32> to vector<16xf32>
    %86 = vector.shape_cast %85 : vector<16xf32> to vector<16x1xf32>
    %87 = vector.broadcast %86 : vector<16x1xf32> to vector<16x8xf32>
    %88 = arith.subf %84, %87 : vector<16x8xf32>
    %89 = math.exp %88 : vector<16x8xf32>
    %cst_33 = arith.constant dense<0.000000e+00> : vector<16xf32>
    %90 = vector.multi_reduction <add>, %89, %cst_33 [1] : vector<16x8xf32> to vector<16xf32>
    %91 = vector.shape_cast %90 : vector<16xf32> to vector<16x1xf32>
    %92 = arith.truncf %89 : vector<16x8xf32> to vector<16x8xbf16>
    %cst_34 = arith.constant dense<0.000000e+00> : vector<16x8xf32>
    %93 = tpu.matmul %92, %83, %cst_34 {dimension_numbers = #tpu.dot_dimension_numbers<[1], [0], [0], [1], [0, 0, 1, 1], [], []>} : vector<16x8xbf16>, vector<8x8xbf16>, vector<16x8xf32> -> vector<16x8xf32>
    %94 = tpu.reciprocal %91 {approx = true} : vector<16x1xf32> -> vector<16x1xf32>
    %95 = arith.mulf %91, %94 : vector<16x1xf32>
    %cst_35 = arith.constant 2.000000e+00 : f32
    %96 = vector.broadcast %cst_35 : f32 to vector<16x1xf32>
    %97 = arith.subf %96, %95 : vector<16x1xf32>
    %98 = arith.mulf %94, %97 : vector<16x1xf32>
    %99 = vector.broadcast %98 : vector<16x1xf32> to vector<16x8xf32>
    %100 = arith.mulf %93, %99 : vector<16x8xf32>
    %c0_36 = arith.constant 0 : index
    %c24 = arith.constant 24 : index
    %101 = vector.load %arg15[%c0_36, %c24] : memref<16x32xf32, #tpu.memory_space<vmem>>, vector<16x8xf32>
    tpu.vector_store %arg15[%c0_36, %c24], %100 {strides = array<i32>} : memref<16x32xf32, #tpu.memory_space<vmem>>, vector<16x8xf32>,
    %c0_37 = arith.constant 0 : index
    %c0_38 = arith.constant 0 : index
    %102 = vector.load %arg15[%c0_37, %c0_38] : memref<16x32xf32, #tpu.memory_space<vmem>>, vector<16x32xf32>
    %103 = arith.truncf %102 : vector<16x32xf32> to vector<16x32xbf16>
    %c0_39 = arith.constant 0 : index
    %c0_40 = arith.constant 0 : index
    %104 = vector.load %arg10[%c0_39, %c0_40] : memref<32x32xbf16, #tpu.memory_space<vmem>>, vector<32x32xbf16>
    %cst_41 = arith.constant dense<0.000000e+00> : vector<16x32xf32>
    %105 = tpu.matmul %103, %104, %cst_41 {dimension_numbers = #tpu.dot_dimension_numbers<[1], [0], [0], [1], [0, 0, 1, 1], [], []>} : vector<16x32xbf16>, vector<32x32xbf16>, vector<16x32xf32> -> vector<16x32xf32>
    %c0_42 = arith.constant 0 : index
    %c0_43 = arith.constant 0 : index
    %106 = vector.load %arg11[%c0_42, %c0_43] : memref<1x32xf32, #tpu.memory_space<vmem>>, vector<1x32xf32>
    %107 = vector.broadcast %106 : vector<1x32xf32> to vector<16x32xf32>
    %108 = arith.addf %105, %107 : vector<16x32xf32>
    %c0_44 = arith.constant 0 : index
    %c0_45 = arith.constant 0 : index
    %c0_46 = arith.constant 0 : index
    %109 = vector.load %arg12[%c0_44, %c0_45, %c0_46] : memref<1x16x32xf32, #tpu.memory_space<vmem>>, vector<1x16x32xf32>
    %110 = vector.shape_cast %109 : vector<1x16x32xf32> to vector<16x32xf32>
    %111 = vector.shape_cast %108 : vector<16x32xf32> to vector<1x16x32xf32>
    tpu.vector_store %arg12[%c0_44, %c0_45, %c0_46], %111 {strides = array<i32>} : memref<1x16x32xf32, #tpu.memory_space<vmem>>, vector<1x16x32xf32>,
    return
  }
  func.func @transform_0(%arg0: i32, %arg1: i32) -> (i32, i32, i32) {
    %c0_i32 = arith.constant 0 : i32
    %c0_i32_0 = arith.constant 0 : i32
    return %arg0, %arg1, %c0_i32 : i32, i32, i32
  }
  func.func @transform_1(%arg0: i32, %arg1: i32) -> (i32, i32, i32) {
    %c0_i32 = arith.constant 0 : i32
    %c0_i32_0 = arith.constant 0 : i32
    %c0_i32_1 = arith.constant 0 : i32
    return %arg0, %c0_i32, %c0_i32_0 : i32, i32, i32
  }
  func.func @transform_2(%arg0: i32, %arg1: i32) -> (i32, i32) {
    %c0_i32 = arith.constant 0 : i32
    %c0_i32_0 = arith.constant 0 : i32
    %c0_i32_1 = arith.constant 0 : i32
    return %c0_i32, %c0_i32_0 : i32, i32
  }
  func.func @transform_3(%arg0: i32, %arg1: i32) -> (i32, i32) {
    %c0_i32 = arith.constant 0 : i32
    %c0_i32_0 = arith.constant 0 : i32
    %c0_i32_1 = arith.constant 0 : i32
    return %c0_i32, %c0_i32_0 : i32, i32
  }
  func.func @transform_4(%arg0: i32, %arg1: i32) -> (i32, i32) {
    %c0_i32 = arith.constant 0 : i32
    %c0_i32_0 = arith.constant 0 : i32
    %c0_i32_1 = arith.constant 0 : i32
    return %c0_i32, %c0_i32_0 : i32, i32
  }
  func.func @transform_5(%arg0: i32, %arg1: i32) -> (i32, i32) {
    %c0_i32 = arith.constant 0 : i32
    %c0_i32_0 = arith.constant 0 : i32
    %c0_i32_1 = arith.constant 0 : i32
    return %c0_i32, %c0_i32_0 : i32, i32
  }
  func.func @transform_6(%arg0: i32, %arg1: i32) -> (i32, i32) {
    %c0_i32 = arith.constant 0 : i32
    %c0_i32_0 = arith.constant 0 : i32
    %c0_i32_1 = arith.constant 0 : i32
    return %c0_i32, %c0_i32_0 : i32, i32
  }
  func.func @transform_7(%arg0: i32, %arg1: i32) -> (i32, i32) {
    %c0_i32 = arith.constant 0 : i32
    %c0_i32_0 = arith.constant 0 : i32
    %c0_i32_1 = arith.constant 0 : i32
    return %c0_i32, %c0_i32_0 : i32, i32
  }
  func.func @transform_8(%arg0: i32, %arg1: i32) -> (i32, i32) {
    %c0_i32 = arith.constant 0 : i32
    %c0_i32_0 = arith.constant 0 : i32
    %c0_i32_1 = arith.constant 0 : i32
    return %c0_i32, %c0_i32_0 : i32, i32
  }
  func.func @transform_9(%arg0: i32, %arg1: i32) -> (i32, i32) {
    %c0_i32 = arith.constant 0 : i32
    %c0_i32_0 = arith.constant 0 : i32
    %c0_i32_1 = arith.constant 0 : i32
    return %c0_i32, %c0_i32_0 : i32, i32
  }
  func.func @transform_10(%arg0: i32, %arg1: i32) -> (i32, i32, i32) {
    %c0_i32 = arith.constant 0 : i32
    %c0_i32_0 = arith.constant 0 : i32
    return %arg0, %arg1, %c0_i32 : i32, i32, i32
  }
}

</mosaic_0001>

<bundles_post_ra>
// kernel: tpu_custom_call.1
= control target key start
LH: loop header
LB: loop body
LE: loop exit
PB: predicated region body
PF: predicated region fallthrough
CT: control target
= control target key end

     0   :  { %s2438_s0 = inlined_call_operand.hbm [shape: bf16[2,16,32], index: 0, kind: input, shape index: {}]   ;;  %s2439_s1 = inlined_call_operand.hbm [shape: bf16[2,8,16], index: 1, kind: input, shape index: {}]   ;;  %s2440_s2 = inlined_call_operand.hbm [shape: bf16[32,32], index: 2, kind: input, shape index: {}]   ;;  %s2441_s3 = inlined_call_operand.vmem [shape: f32[1,32], index: 3, kind: input, shape index: {}]   ;;  %s2442_s4 = inlined_call_operand.vmem [shape: bf16[16,32], index: 4, kind: input, shape index: {}]   ;;  %s2443_s5 = inlined_call_operand.vmem [shape: f32[1,32], index: 5, kind: input, shape index: {}]   ;;  %s2444_s6 = inlined_call_operand.hbm [shape: bf16[16,32], index: 6, kind: input, shape index: {}]   ;;  %s2445_s7 = inlined_call_operand.vmem [shape: f32[1,32], index: 7, kind: input, shape index: {}]   ;;  %s2446_s8 = inlined_call_operand.vmem [shape: bf16[32,32], index: 8, kind: input, shape index: {}]   ;;  %s2447_s9 = inlined_call_operand.vmem [shape: f32[1,32], index: 9, kind: input, shape index: {}]   ;;  %s2448_s10 = inlined_call_operand.hbm [shape: f32[2,16,32], index: 10, kind: output, shape index: {}]  }
   0x1   :  { %2460 = sst [smem:[#allocation24_spill]] %s2438_s0 }
   0x2   :  { %2461 = sst [smem:[#allocation25_spill]] %s2440_s2 }
   0x3   :  { %2462 = sst [smem:[#allocation26_spill]] %s2444_s6 }
   0x4   :  { %2463 = sst [smem:[#allocation27_spill]] %s2447_s9 }
   0x5   :  { %2464 = sst [smem:[#allocation28_spill]] %s2448_s10 }
   0x6   :  { %15 = vsyncpa [#allocation6], 0 }
   0x7   :  { %17 = vsyncpa [#allocation6 + $0x1], 0 }
   0x8   :  { %18 = vsyncpa [#allocation9], 0 }
   0x9   :  { %20 = vsyncpa [#allocation9 + $0x1], 0 }
   0xa   :  { %21 = vsyncpa [#allocation12], 0 }
   0xb   :  { %22 = vsyncpa [#allocation7], 0 }
   0xc   :  { %24 = vsyncpa [#allocation7 + $0x1], 0  ;;  %s2014_s13 = smov 0   ;;  %s2016_s14 = smov 0  }
   0xd   :  { %s2018_s15 = smov 0   ;;  %s2020_s16 = smov 0  }
   0xe   :  { %s2022_s17 = smov 0   ;;  %s2024_s18 = smov 0  }
   0xf LB: > { %2465 = sst [smem:[#allocation19_spill]] %s1921_s13  ;;  %s2045_s19 = sadd.s32 4294967295, %s1941_s18   ;;  %s1941_s18 = sphi %s2024_s18, %s30_s18   ;;  %s1937_s17 = sphi %s2022_s17, %s2502_s17   ;;  %s1933_s16 = sphi %s2020_s16, %s2501_s16   ;;  %s1929_s15 = sphi %s2018_s15, %s2497_s15   ;;  %s1925_s14 = sphi %s2016_s14, %s2500_s14   ;;  %s1921_s13 = sphi %s2014_s13, %s2499_s13  }
  0x10   : > { %2466 = sst [smem:[#allocation20_spill]] %s1929_s15  ;;  %s1441_s20 = sadd.s32 4294967294, %s1941_s18  }
  0x11   : > { %p64_p0 = scmp.ne.s32.totalorder %s1925_s14, %s1921_s13  ;;  %p2450_p1 = scmp.eq.s32.totalorder %s2045_s19, 0 }
  0x12   : > { %p290_p3 = scmp.eq.s32.totalorder %s1441_s20, 1  ;;  %p1442_p5 = scmp.ge.s32.totalorder %s1941_s18, 1 }
  0x13   : > { %p2054_p4 = por %p2450_p1, %p64_p0  ;;  %p297_p7 = scmp.lt.s32.totalorder %s1941_s18, 3 }
  0x14   : > { %p2059_p6 = por %p290_p3, %p64_p0  ;;  %s1943_s24 = smov [#allocation10]  }
  0x15   : > { %s2467_s21 = scalar_select %p2054_p4, 1, 0 }
  0x16   : > { %s2468_s22 = scalar_select %p2059_p6, 1, 0 }
  0x17   : > { %p2064_p8 = pnand %p1442_p5, %p297_p7  ;;  %s309_s25 = sshll.u32 %s1943_s24, 4  ;;  %s2068_s25 = int_to_ptr.vmem [resolvable:$true] %s309_s25 }
  0x18   : > { %2469 = sst [smem:[#allocation21_spill]] %s2468_s22  ;;  %s1944_s27 = smov [#allocation11]  }
  0x19   : > { %s2470_s23 = scalar_select %p2064_p8, 1, 0 }
  0x1a   : > { %p1605_p9 = pneg %p2064_p8  ;;  %s331_s28 = sshll.u32 %s1944_s27, 4  ;;  %s2079_s28 = int_to_ptr.vmem [resolvable:$true] %s331_s28 }
  0x1b   : > { %s2472_s2 = sld [smem:[#allocation25_spill]] }
  0x1c   : > { %p2075_p11 = pnand %p1605_p9, %p2450_p1 }
  0x1e   : > { %p1733_p13 = pneg %p2075_p11 }
  0x21   : > { %s1731_s11 = scalar_lea.hbm %s2472_s2, 256 }
  0x22   : > { %p1732_p12 = scmp.ne.s32.totalorder %s2472_s2, %s1731_s11  ;;  %p1738_p5 = scmp.lt.u32.totalorder %s1731_s11, %s2472_s2 }
  0x24   : > { %p1734_p0 = pnand %p1733_p13, %p1732_p12 }
  0x26   : > { %p1735_p3 = pneg %p1734_p0 }
  0x28   : > { %p1740_p7 = pnand %p1738_p5, %p1735_p3 }
  0x2a   : > { %1743 = shalt.err (!%p1740_p7)
}
  0x2b   : > { %s1744_s27 = scalar_lea.vmem %s2068_s25, 256  ;;  %p1752_p2 = scmp.lt.s32.totalorder %s2068_s25, %s2068_s25 }
  0x2c   : > { %p1745_p9 = scmp.ne.s32.totalorder %s2068_s25, %s1744_s27  ;;  %p1753_p12 = scmp.lt.s32.totalorder %s1744_s27, %s1744_s27 }
  0x2e   : > { %p1747_p10 = pnand %p1745_p9, %p1733_p13  ;;  %p1754_p0 = por %p1753_p12, %p1752_p2 }
  0x30   : > { %p1748_p1 = pneg %p1747_p10 }
  0x32   : > { %p1755_p6 = pnand %p1754_p0, %p1748_p1 }
  0x34   : > { %1758 = shalt.err (!%p1755_p6)
}
  0x35   : > { %s2453_s22 = smov 64   ;;  %s2454_s29 = smov 4  }
  0x36   : > { %1608 = dma.hbm_to_vmem [thread:$0]  (!%p2075_p11), %s2472_s2, 256, %s2068_s25, [#allocation9], %s2453_s22, %s2453_s22, %s2454_s29  }
  0x37   : > { %s2473_s6 = sld [smem:[#allocation26_spill]] }
  0x3d   : > { %s1759_s24 = scalar_lea.hbm %s2473_s6, 128 }
  0x3e   : > { %p1760_p1 = scmp.ne.s32.totalorder %s2473_s6, %s1759_s24  ;;  %p1766_p10 = scmp.lt.u32.totalorder %s1759_s24, %s2473_s6 }
  0x40   : > { %p1762_p2 = pnand %p1760_p1, %p1733_p13 }
  0x42   : > { %p1763_p6 = pneg %p1762_p2 }
  0x44   : > { %p1768_p3 = pnand %p1766_p10, %p1763_p6 }
  0x46   : > { %1771 = shalt.err (!%p1768_p3)
}
  0x47   : > { %s1772_s25 = scalar_lea.vmem %s2079_s28, 128  ;;  %p1780_p12 = scmp.lt.s32.totalorder %s2079_s28, %s2079_s28 }
  0x48   : > { %p1773_p5 = scmp.ne.s32.totalorder %s2079_s28, %s1772_s25  ;;  %p1781_p0 = scmp.lt.s32.totalorder %s1772_s25, %s1772_s25 }
  0x4a   : > { %p1775_p7 = pnand %p1773_p5, %p1733_p13  ;;  %p1782_p1 = por %p1781_p0, %p1780_p12 }
  0x4c   : > { %p1776_p9 = pneg %p1775_p7 }
  0x4e   : > { %p1783_p2 = pnand %p1782_p1, %p1776_p9 }
  0x50   : > { %1786 = shalt.err (!%p1783_p2)
}
  0x51   : > { %1611 = dma.hbm_to_vmem [thread:$0]  (!%p2075_p11), %s2473_s6, 128, %s2079_s28, [#allocation12], %s2453_s22, %s2453_s22, %s2454_s29  }
  0x52   : > { %s42_s13 = sadd.s32 1, %s1937_s17  ;;  %s51_s26 = sadd.s32 1, %s1929_s15 }
  0x53   : > { %p44_p13 = scmp.ge.s32.totalorder %s42_s13, 2  ;;  %p58_p6 = scmp.ne.s32.totalorder %s1929_s15, %s1925_s14 }
  0x54   : > { %p59_p10 = scmp.eq.s32.totalorder %s1941_s18, 0  ;;  %p1625_p3 = scmp.lt.s32.totalorder %s1941_s18, 2 }
  0x55   : > { %s2504_s13 = smov (%p44_p13, %s42_s13), 0  ;;  %p2475_p7 = scmp.eq.s32.totalorder %s2045_s19, 1 }
  0x56   : > { %2474 = sst [smem:[#allocation22_spill]] %s2504_s13  ;;  %p60_p5 = por %p59_p10, %p58_p6 }
  0x57   : > { %p2149_p9 = por %p2475_p7, %p58_p6  ;;  %s46_s11 = ssub.s32 %s1937_s17, %s2504_s13 }
  0x58   : > { %s2156_s12 = sand.u32 1, %s1929_s15   ;;  %p49_p11 = scmp.eq.s32.totalorder %s46_s11, 0 }
  0x59   : > { %s2476_s30 = scalar_select %p2149_p9, 1, 0 }
  0x5a   : > { %s1446_s28 = sshll.u32 %s2156_s12, 3  ;;  %s1487_s20 = sshll.u32 %s1937_s17, 7 }
  0x5b   : > { %s2161_s24 = scalar_select %p49_p11, %s1929_s15, %s51_s26  }
  0x5c   : > { %s2478_s0 = sld [smem:[#allocation24_spill]]  ;;  %s358_s10 = scalar_lea.vmem [#allocation5], %s1446_s28 }
  0x5d   : > { %2477 = sst [smem:[#allocation23_spill]] %s2161_s24  ;;  %s367_s22 = sshll.u32 %s358_s10, 4  ;;  %s2174_s22 = int_to_ptr.vmem [resolvable:$true] %s367_s22 }
  0x5e   : > { %p2170_p12 = pnand %p1625_p3, %p60_p5  ;;  %s355_s11 = scalar_lea.sflag [#allocation6], %s2156_s12 }
  0x60   : > { %p1789_p1 = pneg %p2170_p12 }
  0x62   : > { %s2166_s9 = scalar_lea.hbm %s2478_s0, %s1487_s20  ;;  %s1792_s25 = scalar_lea.hbm %s2478_s0, 256 }
  0x63   : > { %s1787_s27 = scalar_lea.hbm %s2166_s9, 128  ;;  %p1793_p6 = scmp.lt.u32.totalorder %s2166_s9, %s2478_s0 }
  0x64   : > { %p1788_p0 = scmp.ne.s32.totalorder %s2166_s9, %s1787_s27  ;;  %p1794_p10 = scmp.lt.u32.totalorder %s1792_s25, %s1787_s27 }
  0x65   : > { %p1796_p5 = scmp.lt.u32.totalorder %s1787_s27, %s2166_s9 }
  0x66   : > { %p1790_p2 = pnand %p1789_p1, %p1788_p0  ;;  %p1795_p3 = por %p1794_p10, %p1793_p6 }
  0x68   : > { %p1791_p13 = pneg %p1790_p2  ;;  %p1797_p7 = por %p1796_p5, %p1795_p3 }
  0x6a   : > { %p1798_p11 = pnand %p1797_p7, %p1791_p13 }
  0x6c   : > { %1801 = shalt.err (!%p1798_p11)
}
  0x6d   : > { %s1802_s26 = scalar_lea.vmem %s2174_s22, 128  ;;  %s1947_s28 = smov [#allocation5]  }
  0x6e   : > { %p1803_p0 = scmp.ne.s32.totalorder %s2174_s22, %s1802_s26  ;;  %s1807_s20 = sshll.u32 %s1947_s28, 4  ;;  %s1808_s20 = int_to_ptr.vmem [resolvable:$false] %s1807_s20 }
  0x6f   : > { %s1809_s2 = scalar_lea.vmem %s1808_s20, 256  ;;  %p1810_p4 = scmp.lt.s32.totalorder %s2174_s22, %s1808_s20 }
  0x70   : > { %p1805_p2 = pnand %p1803_p0, %p1789_p1  ;;  %p1811_p6 = scmp.lt.s32.totalorder %s1809_s2, %s1802_s26 }
  0x72   : > { %p1806_p9 = pneg %p1805_p2  ;;  %p1812_p10 = por %p1811_p6, %p1810_p4 }
  0x74   : > { %p1813_p3 = pnand %p1812_p10, %p1806_p9 }
  0x76   : > { %1816 = shalt.err (!%p1813_p3)
}
  0x77   : > { %s2480_s27 = smov 4   ;;  %s2481_s25 = smov 64  }
  0x78   : > { %1615 = dma.hbm_to_vmem [thread:$0]  (!%p2170_p12), %s2166_s9, 128, %s2174_s22, %s355_s11, %s2481_s25, %s2481_s25, %s2480_s27  }
  0x79   : > { %s1449_s10 = sshll.u32 %s2156_s12, 2  ;;  %s1450_s28 = sshll.u32 %s1937_s17, 6 }
  0x7a   : > { %s2213_s2 = scalar_lea.hbm %s2439_s1, %s1450_s28  ;;  %s381_s0 = scalar_lea.vmem [#allocation8], %s1449_s10 }
  0x7b   : > { %s388_s6 = sshll.u32 %s381_s0, 4  ;;  %s2482_s13 = sand.u32 1, %s1941_s18   ;;  %s389_s6 = int_to_ptr.vmem [resolvable:$true] %s388_s6 }
  0x7c   : > { %s378_s24 = scalar_lea.sflag [#allocation9], %s2482_s13  ;;  %s1817_s15 = scalar_lea.hbm %s2213_s2, 64 }
  0x7d   : > { %p1818_p4 = scmp.ne.s32.totalorder %s2213_s2, %s1817_s15  ;;  %s1822_s9 = scalar_lea.hbm %s2439_s1, 128 }
  0x7e   : > { %p1823_p5 = scmp.lt.u32.totalorder %s2213_s2, %s2439_s1  ;;  %p1824_p7 = scmp.lt.u32.totalorder %s1822_s9, %s1817_s15 }
  0x7f   : > { %p1820_p9 = pnand %p1818_p4, %p1789_p1  ;;  %p1826_p0 = scmp.lt.u32.totalorder %s1817_s15, %s2213_s2 }
  0x80   : > { %p1825_p11 = por %p1824_p7, %p1823_p5 }
  0x81   : > { %p1821_p13 = pneg %p1820_p9 }
  0x82   : > { %p1827_p2 = por %p1826_p0, %p1825_p11 }
  0x84   : > { %p1828_p6 = pnand %p1827_p2, %p1821_p13 }
  0x86   : > { %1831 = shalt.err (!%p1828_p6)
}
  0x87   : > { %s1832_s0 = scalar_lea.vmem %s389_s6, 64  ;;  %s1948_s13 = smov [#allocation8]  }
  0x88   : > { %p1833_p10 = scmp.ne.s32.totalorder %s389_s6, %s1832_s0  ;;  %s1837_s25 = sshll.u32 %s1948_s13, 4  ;;  %s1838_s25 = int_to_ptr.vmem [resolvable:$false] %s1837_s25 }
  0x89   : > { %s1839_s10 = scalar_lea.vmem %s1838_s25, 128  ;;  %p1840_p9 = scmp.lt.s32.totalorder %s389_s6, %s1838_s25 }
  0x8a   : > { %p1835_p3 = pnand %p1833_p10, %p1789_p1  ;;  %p1841_p8 = scmp.lt.s32.totalorder %s1839_s10, %s1832_s0 }
  0x8c   : > { %p1836_p4 = pneg %p1835_p3  ;;  %p1842_p5 = por %p1841_p8, %p1840_p9 }
  0x8e   : > { %p1843_p7 = pnand %p1842_p5, %p1836_p4 }
  0x90   : > { %1846 = shalt.err (!%p1843_p7)
}
  0x91   : > { %1618 = dma.hbm_to_vmem [thread:$0]  (!%p2170_p12), %s2213_s2, 64, %s389_s6, %s378_s24  }
  0x92   : > { %p2483_p13 = scmp.ne.s32.totalorder %s2470_s23, 0 }
  0x93   : > { %s2239_s15 = sand.u32 (!%p2483_p13), 1, %s1925_s14   ;;  %p2484_p1 = scmp.ne.s32.totalorder (!%p2483_p13), %s2467_s21, 0 }
  0x94   : > { %397 = sbr.rel (%p2483_p13) target bundleno = 1484 (0x5cc), region = 60  ;;  %s1452_s28 = sshll.u32 (!%p2483_p13), %s2239_s15, 3 }
  0x95   : > { %s400_s26 = scalar_lea.sflag (!%p2483_p13), [#allocation6], %s2239_s15  ;;  %s403_s20 = scalar_lea.vmem (!%p2483_p13), [#allocation5], %s1452_s28 }
  0x9b   : > { %1900 = dma.done.wait (%p2484_p1), %s400_s26, 128  }
  0x9c   : > { %1902 = vsyncadd (%p2484_p1), %s400_s26, 4294967168  ;;  %s408_s6 = sand.u32 1, %s2045_s19   ;;  %s1453_s23 = sshll.u32 %s2239_s15, 2 }
  0x9d   : > { %s409_s29 = scalar_lea.sflag [#allocation9], %s408_s6  ;;  %s412_s24 = scalar_lea.vmem [#allocation8], %s1453_s23 }
  0x9e   : > { %1904 = dma.done.wait (%p2484_p1), %s409_s29, 64  }
  0x9f   : > { %1906 = vsyncadd (%p2484_p1), %s409_s29, 4294967232  ;;  %p2485_p8 = scmp.eq.s32.totalorder %s2045_s19, 0 }
  0xa1   : > { %1908 = dma.done.wait (%p2485_p8), [#allocation9], 256   ;;  %p2486_p12 = pmov %p2485_p8 }
  0xa2   : > { %p2487_p11 = pmov %p2485_p8 }
  0xa3   : > { %1910 = vsyncadd (%p2486_p12), [#allocation9], 4294967040 }
  0xa4   : > { %1912 = dma.done.wait (%p2487_p11), [#allocation12], 128   ;;  %p2488_p0 = pmov %p2485_p8 }
  0xa5   : > { %v1949_v0 = vmov 0.0   ;;  %vm1950_vm0 = vmmov 0   ;;  %v1690_v1 = vld [vmem:[%s2442_s4] sm:$0xff]   ;;  %v469_v2 = vld [vmem:[%s412_s24] sm:$0xf]  ;;  %vm485_vm1 = vcmask 130048  }
  0xa6   : > { %1914 = vsyncadd (%p2488_p0), [#allocation12], 4294967168  ;;  %1515 = vmatprep.subr.bf16.mxu0 %v1949_v0  ;;  %1517 = vmatprep.mubr.msk.bf16.mxu0 %vm1950_vm0, %v1949_v0  ;;  %v1691_v3 = vld [vmem:[#allocation10] sm:$0xff]   ;;  %v1692_v4 = vld [vmem:[#allocation10 + $0x8] sm:$0xff]   ;;  %vm619_vm2 = vcmask 261120   ;;  %vm585_vm3 = vcmask 257024  }
  0xa7   : > { %1521 = vmatprep.subr.bf16.mxu1 %v1949_v0  ;;  %1523 = vmatprep.mubr.msk.bf16.mxu1 %vm1950_vm0, %v1949_v0  ;;  %v1693_v5 = vld [vmem:[%s403_s20] sm:$0xff]   ;;  %vm669_vm4 = vcmask 64512   ;;  %s1951_s11 = smov 112   ;;  %s1952_s27 = smov 120   ;;  %vm739_vm5 = vcmask 1043456   ;;  %vm940_vm6 = vcmask 130112  }
  0xa8   : > { %1516 = vmatpush3.bf16.msra.mxu0 %v1690_v1  ;;  %v1694_v6 = vld [vmem:[#allocation11] sm:$0xff]   ;;  %s1953_s0 = smov 104   ;;  %s1954_s10 = smov 8   ;;  %vm1080_vm7 = vcmask 195712   ;;  %vm1220_vm8 = vcmask 261312  }
  0xa9   : > { %1527 = vmatprep.subr.bf16.mxu0 %v1949_v0  ;;  %1522 = vmatpush3.bf16.msra.mxu1 %v1694_v6  ;;  %v1457_v7 = vld [vmem:[%s2443_s5] ss:$0 sm:$0xff]  ;;  %s1955_s23 = smov 16   ;;  %s1956_s29 = smov 24  }
  0xaa   : > { %1535 = vmatprep.subr.bf16.mxu1 %v1949_v0  ;;  %v1463_v14 = vld [vmem:[%s2441_s3] ss:$0 sm:$0xff]  ;;  %s1456_s24 = sshll.u32 %s2239_s15, 4  ;;  %s2489_s19 = sld [smem:[#allocation27_spill]] }
  0xab   : > { %1518 = vmatmul.mubr.msk.bf16.vlgmr.msra.gmra.mrb[0].mxu0 %vm485_vm1, %v469_v2  ;;  %v1460_v27 = vld [vmem:[%s2445_s7] ss:$0 sm:$0xff]  ;;  %s461_s22 = scalar_lea.vmem [#allocation13], %s1456_s24  ;;  %s1488_s9 = sshll.u32 %s1933_s16, 8 }
  0xac   : > { %1528 = vmatpush3.bf16.msra.mxu0 %v1691_v3  ;;  %1531 = vmatprep.mubr.msk.bf16.mxu0 %vm1950_vm0, %v1949_v0  ;;  %s1311_s12 = sshll.u32 %s461_s22, 4  ;;  %s1296_s16 = scalar_lea.sflag [#allocation7], %s2239_s15  ;;  %s2381_s12 = int_to_ptr.vmem [resolvable:$true] %s1311_s12 }
  0xad   : > { %1529 = vmatprep.subr.bf16.mxu0 %v1949_v0  ;;  %1524 = vmatmul.mubr.msk.bf16.vlgmr.msra.gmra.mrb[0].mxu1 %vm485_vm1, %v469_v2  ;;  %s1847_s25 = scalar_lea.vmem %s2381_s12, 256  ;;  %p2491_p6 = scmp.ne.s32.totalorder %s2476_s30, 0 }
  0xae   : > { %1537 = vmatprep.mubr.msk.bf16.mxu1 %vm1950_vm0, %v1949_v0  ;;  %p1848_p2 = scmp.ne.s32.totalorder %s2381_s12, %s1847_s25  ;;  %s1957_s28 = smov [#allocation13]  }
  0xaf   : > { %s1851_s26 = sshll.u32 %s1957_s28, 4  ;;  %s1852_s26 = int_to_ptr.vmem [resolvable:$false] %s1851_s26 }
  0xb0   : > { %1530 = vmatpush3.bf16.msra.mxu0 %v1692_v4  ;;  %p1849_p10 = pnand %p1848_p2, %p2491_p6  ;;  %s1853_s20 = scalar_lea.vmem %s1852_s26, 512 }
  0xb1   : > { %1541 = vmatprep.subr.bf16.mxu0 %v1949_v0  ;;  %p1854_p4 = scmp.lt.s32.totalorder %s2381_s12, %s1852_s26  ;;  %p1855_p9 = scmp.lt.s32.totalorder %s1853_s20, %s1847_s25 }
  0xb2   : > { %p1850_p3 = pneg %p1849_p10 }
  0xb3   : > { %1532 = vmatmul.mubr.msk.bf16.vlgmr.msra.gmra.mrb[4].mxu0 %vm619_vm2, %v1693_v5  ;;  %p1856_p5 = por %p1855_p9, %p1854_p4 }
  0xb4   : > { %1543 = vmatprep.mubr.msk.bf16.mxu0 %vm1950_vm0, %v1949_v0 }
  0xb5   : > { %p1857_p7 = pnand %p1856_p5, %p1850_p3 }
 0x17e   : > { %v523_v8 = vpop.f32.mrb[0].mxu0 }
 0x17f   : > { %v524_v9 = vadd.f32 %v1457_v7, %v523_v8  ;;  %v1519_v10 = vpop.f32.mrb[1].mxu0 }
 0x180   : > { %v526_v11 = vpop.f32.mrb[2].mxu0  ;;  %v578_v28 = vpop.f32.mrb[0].mxu1 }
 0x181   : > { %v584_v12 = vpack.c.bf16 %v524_v9, %v524_v9  ;;  %v1520_v13 = vpop.f32.mrb[3].mxu0  ;;  %v579_v29 = vadd.f32 %v1460_v27, %v578_v28  ;;  %v1525_v30 = vpop.f32.mrb[1].mxu1 }
 0x182   : > { %v581_v31 = vpop.f32.mrb[2].mxu1 }
 0x183   : > { %586 = vst.msk [vmem:[#allocation2] sm:$0xf] %vm585_vm3, %v584_v12  ;;  %v587_v32 = vpack.c.bf16 %v579_v29, %v579_v29  ;;  %v1526_v33 = vpop.f32.mrb[3].mxu1 }
 0x185   : > { %588 = vst.msk [vmem:[#allocation3] sm:$0xf] %vm585_vm3, %v587_v32 }
 0x186   : > { %v657_v15 = vpop.f32.mrb[4].mxu0 }
 0x187   : > { %v658_v16 = vadd.f32 %v1463_v14, %v657_v15  ;;  %v1533_v17 = vpop.f32.mrb[5].mxu0 }
 0x188   : > { %v660_v18 = vpop.f32.mrb[6].mxu0 }
 0x189   : > { %v664_v19 = vmul.f32 0.35355338, %v658_v16  ;;  %v661_v20 = vadd.f32 %v1463_v14, %v660_v18  ;;  %v1534_v21 = vpop.f32.mrb[7].mxu0 }
 0x18a   : > { %v666_v22 = vld [vmem:[#allocation2] sm:$0xf] }
 0x18b   : > { %v665_v23 = vmul.f32 0.35355338, %v661_v20  ;;  %v674_v24 = vsel %vm669_vm4, %v666_v22, 0  ;;  %v1470_v25 = vcombine.low %v666_v22, %v666_v22 }
 0x18c   : > { %1536 = vmatpush3.bf16.xpose.msra.mxu1 %v674_v24  ;;  %v667_v34 = vld [vmem:[#allocation3] sm:$0xf] }
 0x18d   : > { %v668_v26 = vpack.c.bf16 %v665_v23, %v664_v19  ;;  %945 = vrot.lane.b32.xlu1 %v1470_v25, %s1951_s11  ;;  %802 = vrot.lane.b32.xlu0 %v1470_v25, %s1952_s27  ;;  %v741_v35 = vsel %vm739_vm5, %v667_v34, 0  ;;  %v1472_v51 = vcombine.low %v667_v34, %v667_v34 }
 0x18e   : > { %1547 = vmatprep.subr.bf16.mxu1 %v1949_v0  ;;  %1542 = vmatpush3.bf16.msra.mxu0 %v741_v35 }
 0x18f   : > { %1553 = vmatprep.subr.bf16.mxu0 %v1949_v0 }
 0x191   : > { %943 = vrot.lane.b32.xlu1 %v668_v26, %s1951_s11  ;;  %797 = vrot.lane.b32.xlu0 %v668_v26, %s1952_s27 }
 0x193   : > { %1538 = vmatmul.mubr.msk.bf16.vlgmr.msra.gmra.mrb[4].mxu1 %vm669_vm4, %v668_v26 }
 0x194   : > { %1549 = vmatprep.mubr.msk.bf16.mxu1 %vm1950_vm0, %v1949_v0 }
 0x195   : > { %1083 = vrot.lane.b32.xlu1 %v668_v26, %s1953_s0  ;;  %1085 = vrot.lane.b32.xlu0 %v1470_v25, %s1953_s0 }
 0x1ff   : > { %v803_v36 = vpop.permute.xlu0 %802  ;;  %v946_v38 = vpop.permute.xlu1 %945 }
 0x200   : > { %v808_v37 = vsel %vm669_vm4, %v803_v36, 0  ;;  %v951_v40 = vsel %vm669_vm4, %v946_v38, 0 }
 0x201   : > { %1548 = vmatpush3.bf16.xpose.msra.mxu1 %v808_v37 }
 0x202   : > { %1559 = vmatprep.subr.bf16.mxu1 %v1949_v0 }
 0x203   : > { %v798_v39 = vpop.permute.xlu0 %797  ;;  %v944_v42 = vpop.permute.xlu1 %943 }
 0x207   : > { %v1086_v41 = vpop.permute.xlu0 %1085  ;;  %v1084_v44 = vpop.permute.xlu1 %1083 }
 0x208   : > { %1550 = vmatmul.mubr.msk.bf16.vlgmr.msra.gmra.mrb[8].mxu1 %vm669_vm4, %v798_v39  ;;  %v1091_v43 = vsel %vm669_vm4, %v1086_v41, 0 }
 0x209   : > { %1560 = vmatpush3.bf16.xpose.msra.mxu1 %v951_v40  ;;  %1561 = vmatprep.mubr.msk.bf16.mxu1 %vm1950_vm0, %v1949_v0 }
 0x20a   : > { %1571 = vmatprep.subr.bf16.mxu1 %v1949_v0 }
 0x210   : > { %1562 = vmatmul.mubr.msk.bf16.vlgmr.msra.gmra.mrb[12].mxu1 %vm669_vm4, %v944_v42 }
 0x211   : > { %1572 = vmatpush3.bf16.xpose.msra.mxu1 %v1091_v43  ;;  %1573 = vmatprep.mubr.msk.bf16.mxu1 %vm1950_vm0, %v1949_v0 }
 0x212   : > { %1583 = vmatprep.subr.bf16.mxu1 %v1949_v0 }
 0x218   : > { %1574 = vmatmul.mubr.msk.bf16.vlgmr.msra.gmra.mrb[16].mxu1 %vm669_vm4, %v1084_v44 }
 0x219   : > { %1587 = vmatprep.mubr.msk.bf16.mxu1 %vm1950_vm0, %v1949_v0 }
 0x266   : > { %v710_v45 = vpop.f32.mrb[4].mxu1 }
 0x267   : > { %v1539_v46 = vpop.f32.mrb[5].mxu1  ;;  %v717_v47 = vsel %vm669_vm4, %v710_v45, -inf }
 0x268   : > { %718 = vmax.xlane.f32.xlu0 %v717_v47  ;;  %v713_v48 = vpop.f32.mrb[6].mxu1 }
 0x269   : > { %v1540_v49 = vpop.f32.mrb[7].mxu1  ;;  %v720_v50 = vsel %vm669_vm4, %v713_v48, -inf }
 0x26a   : > { %721 = vmax.xlane.f32.xlu1 %v720_v50 }
 0x27b   : > { %873 = vrot.lane.b32.xlu1 %v1472_v51, %s1952_s27 }
 0x2db   : > { %v844_v52 = vpop.f32.mrb[8].mxu1 }
 0x2dc   : > { %v1551_v53 = vpop.f32.mrb[9].mxu1  ;;  %v851_v54 = vsel %vm669_vm4, %v844_v52, -inf }
 0x2dd   : > { %852 = vmax.xlane.f32.xlu0 %v851_v54  ;;  %v847_v55 = vpop.f32.mrb[10].mxu1 }
 0x2de   : > { %v1552_v56 = vpop.f32.mrb[11].mxu1  ;;  %v854_v57 = vsel %vm669_vm4, %v847_v55, -inf }
 0x2e1   : > { %855 = vmax.xlane.f32.xlu0 %v854_v57 }
 0x2e3   : > { %v987_v58 = vpop.f32.mrb[12].mxu1 }
 0x2e4   : > { %v1563_v59 = vpop.f32.mrb[13].mxu1  ;;  %v994_v60 = vsel %vm669_vm4, %v987_v58, -inf }
 0x2e5   : > { %995 = vmax.xlane.f32.xlu1 %v994_v60  ;;  %v990_v61 = vpop.f32.mrb[14].mxu1 }
 0x2e6   : > { %v1564_v62 = vpop.f32.mrb[15].mxu1  ;;  %v997_v63 = vsel %vm669_vm4, %v990_v61, -inf }
 0x2e7   : > { %998 = vmax.xlane.f32.xlu0 %v997_v63 }
 0x2eb   : > { %v1127_v1 = vpop.f32.mrb[16].mxu1 }
 0x2ec   : > { %v1575_v2 = vpop.f32.mrb[17].mxu1  ;;  %v1134_v3 = vsel %vm669_vm4, %v1127_v1, -inf }
 0x2ed   : > { %1135 = vmax.xlane.f32.xlu1 %v1134_v3  ;;  %v1130_v4 = vpop.f32.mrb[18].mxu1 }
 0x2ee   : > { %v1576_v5 = vpop.f32.mrb[19].mxu1  ;;  %v1137_v6 = vsel %vm669_vm4, %v1130_v4, -inf }
 0x2ef   : > { %1138 = vmax.xlane.f32.xlu0 %v1137_v6 }
 0x2f5   : > { %v719_v7 = vpop.xlane.xlu0 %718 }
 0x2f6   : > { %v723_v8 = vsub.f32 %v710_v45, %v719_v7 }
 0x2f7   : > { %v722_v9 = vpop.xlane.xlu1 %721 }
 0x2f8   : > { %v725_v10 = vmul.f32 1.442695, %v723_v8  ;;  %v724_v11 = vsub.f32 %v713_v48, %v722_v9 }
 0x2fa   : > { %v727_v12 = vmul.f32 1.442695, %v724_v11  ;;  %1699 = vpow2.f32 %v725_v10 }
 0x2fb   : > { %v874_v13 = vpop.permute.xlu1 %873 }
 0x2fc   : > { %1701 = vpow2.f32 %v727_v12  ;;  %v879_v17 = vsel %vm739_vm5, %v874_v13, 0 }
 0x2fe   : > { %1153 = vrot.lane.b32.xlu1 %v1472_v51, %s1953_s0  ;;  %s2490_s0 = sld [smem:[#allocation28_spill]] }
 0x304   : > { %v2332_v14 = vpop.eup %1699  ;;  %s2387_s13 = scalar_lea.hbm %s2490_s0, %s1488_s9 }
 0x305   : > { %1013 = vrot.lane.b32.xlu0 %v1472_v51, %s1951_s11 }
 0x306   : > { %v2335_v15 = vpop.eup %1701 }
 0x307   : > { %v735_v16 = vpack.c.bf16 %v2335_v15, %v2332_v14  ;;  %v732_v56 = vsel %vm669_vm4, %v2335_v15, 0.0 }
 0x309   : > { %1544 = vmatmul.mubr.msk.bf16.vlgmr.msra.gmra.mrb[8].mxu0 %vm669_vm4, %v735_v16 }
 0x30a   : > { %1554 = vmatpush3.bf16.msra.mxu0 %v879_v17  ;;  %1555 = vmatprep.mubr.msk.bf16.mxu0 %vm1950_vm0, %v1949_v0 }
 0x30b   : > { %1565 = vmatprep.subr.bf16.mxu0 %v1949_v0 }
 0x36a   : > { %v853_v18 = vpop.xlane.xlu0 %852 }
 0x36b   : > { %v857_v19 = vsub.f32 %v844_v52, %v853_v18 }
 0x36d   : > { %v859_v20 = vmul.f32 1.442695, %v857_v19 }
 0x36e   : > { %v856_v21 = vpop.xlane.xlu0 %855 }
 0x36f   : > { %1703 = vpow2.f32 %v859_v20  ;;  %v858_v22 = vsub.f32 %v847_v55, %v856_v21  ;;  %v729_v55 = vsel %vm669_vm4, %v2332_v14, 0.0 }
 0x371   : > { %v861_v23 = vmul.f32 1.442695, %v858_v22 }
 0x372   : > { %v996_v24 = vpop.xlane.xlu1 %995 }
 0x373   : > { %1705 = vpow2.f32 %v861_v23  ;;  %v1000_v25 = vsub.f32 %v987_v58, %v996_v24 }
 0x374   : > { %v999_v26 = vpop.xlane.xlu0 %998 }
 0x375   : > { %v1002_v27 = vmul.f32 1.442695, %v1000_v25  ;;  %v1001_v28 = vsub.f32 %v990_v61, %v999_v26 }
 0x377   : > { %1707 = vpow2.f32 %v1002_v27  ;;  %v1004_v29 = vmul.f32 1.442695, %v1001_v28 }
 0x379   : > { %v1704_v30 = vpop.eup %1703  ;;  %1709 = vpow2.f32 %v1004_v29 }
 0x37a   : > { %v1136_v31 = vpop.xlane.xlu1 %1135  ;;  %v863_v32 = vsel %vm669_vm4, %v1704_v30, 0.0 }
 0x37b   : > { %v1140_v33 = vsub.f32 %v1127_v1, %v1136_v31  ;;  %864 = vadd.xlane.f32.xlu1 %v863_v32 }
 0x37c   : > { %v1139_v34 = vpop.xlane.xlu0 %1138 }
 0x37d   : > { %v1706_v35 = vpop.eup %1705  ;;  %v1142_v36 = vmul.f32 1.442695, %v1140_v33  ;;  %v1141_v37 = vsub.f32 %v1130_v4, %v1139_v34 }
 0x37e   : > { %v866_v38 = vsel %vm669_vm4, %v1706_v35, 0.0  ;;  %v869_v39 = vpack.c.bf16 %v1706_v35, %v1704_v30  ;;  %v1154_v48 = vpop.permute.xlu1 %1153 }
 0x37f   : > { %1711 = vpow2.f32 %v1142_v36  ;;  %v1144_v40 = vmul.f32 1.442695, %v1141_v37  ;;  %867 = vadd.xlane.f32.xlu0 %v866_v38  ;;  %v1159_v49 = vsel %vm739_vm5, %v1154_v48, 0 }
 0x380   : > { %1556 = vmatmul.mubr.msk.bf16.vlgmr.msra.gmra.mrb[12].mxu0 %vm669_vm4, %v869_v39  ;;  %v1014_v41 = vpop.permute.xlu0 %1013 }
 0x381   : > { %v1708_v42 = vpop.eup %1707  ;;  %1713 = vpow2.f32 %v1144_v40  ;;  %v1019_v43 = vsel %vm739_vm5, %v1014_v41, 0  ;;  %1567 = vmatprep.mubr.msk.bf16.mxu0 %vm1950_vm0, %v1949_v0  ;;  %v1697_v41 = vld [vmem:[%s2446_s8] sm:$0xff]  }
 0x382   : > { %1566 = vmatpush3.bf16.msra.mxu0 %v1019_v43  ;;  %v1006_v44 = vsel %vm669_vm4, %v1708_v42, 0.0  ;;  %1584 = vmatpush3.bf16.msra.mxu1 %v1697_v41 }
 0x383   : > { %v1710_v45 = vpop.eup %1709  ;;  %1007 = vadd.xlane.f32.xlu0 %v1006_v44  ;;  %1577 = vmatprep.subr.bf16.mxu0 %v1949_v0 }
 0x384   : > { %v1009_v46 = vsel %vm669_vm4, %v1710_v45, 0.0  ;;  %v1012_v47 = vpack.c.bf16 %v1710_v45, %v1708_v42  ;;  %1585 = vmatprep.subr.bf16.mxu1 %v1949_v0 }
 0x385   : > { %1010 = vadd.xlane.f32.xlu1 %v1009_v46 }
 0x388   : > { %1568 = vmatmul.mubr.msk.bf16.vlgmr.msra.gmra.mrb[16].mxu0 %vm669_vm4, %v1012_v47  ;;  %v1698_v47 = vld [vmem:[%s2446_s8 + $0x8] sm:$0xff]  }
 0x389   : > { %v1712_v50 = vpop.eup %1711  ;;  %1578 = vmatpush3.bf16.msra.mxu0 %v1159_v49  ;;  %1579 = vmatprep.mubr.msk.bf16.mxu0 %vm1950_vm0, %v1949_v0 }
 0x38a   : > { %v1146_v51 = vsel %vm669_vm4, %v1712_v50, 0.0  ;;  %1586 = vmatpush3.bf16.msra.mxu1 %v1698_v47 }
 0x38b   : > { %v1714_v52 = vpop.eup %1713  ;;  %1147 = vadd.xlane.f32.xlu0 %v1146_v51 }
 0x38c   : > { %v1149_v53 = vsel %vm669_vm4, %v1714_v52, 0.0  ;;  %v1152_v54 = vpack.c.bf16 %v1714_v52, %v1712_v50 }
 0x38d   : > { %1150 = vadd.xlane.f32.xlu1 %v1149_v53 }
 0x38f   : > { %730 = vadd.xlane.f32.xlu0 %v729_v55 }
 0x390   : > { %1580 = vmatmul.mubr.msk.bf16.vlgmr.msra.gmra.mrb[20].mxu0 %vm669_vm4, %v1152_v54 }
 0x391   : > { %733 = vadd.xlane.f32.xlu1 %v732_v56 }
 0x3dc   : > { %v777_v57 = vpop.f32.mrb[8].mxu0 }
 0x3dd   : > { %v1545_v58 = vpop.f32.mrb[9].mxu0 }
 0x3de   : > { %v780_v59 = vpop.f32.mrb[10].mxu0 }
 0x3df   : > { %v1546_v60 = vpop.f32.mrb[11].mxu0 }
 0x408   : > { %v865_v62 = vpop.xlane.xlu1 %864 }
 0x40c   : > { %v868_v61 = vpop.xlane.xlu0 %867 }
 0x410   : > { %v1008_v63 = vpop.xlane.xlu0 %1007 }
 0x412   : > { %v1011_v1 = vpop.xlane.xlu1 %1010 }
 0x418   : > { %v1148_v2 = vpop.xlane.xlu0 %1147 }
 0x41a   : > { %v1151_v3 = vpop.xlane.xlu1 %1150 }
 0x41c   : > { %v731_v4 = vpop.xlane.xlu0 %730 }
 0x41d   : > { %1715 = vrcp.f32 %v731_v4 }
 0x41e   : > { %v734_v5 = vpop.xlane.xlu1 %733 }
 0x41f   : > { %1717 = vrcp.f32 %v734_v5 }
 0x420   : > { %1719 = vrcp.f32 %v865_v62 }
 0x421   : > { %1721 = vrcp.f32 %v868_v61 }
 0x422   : > { %1723 = vrcp.f32 %v1008_v63 }
 0x423   : > { %1725 = vrcp.f32 %v1011_v1 }
 0x424   : > { %1727 = vrcp.f32 %v1148_v2 }
 0x425   : > { %1729 = vrcp.f32 %v1151_v3 }
 0x427   : > { %v1716_v6 = vpop.eup %1715 }
 0x428   : > { %v786_v7 = vmul.f32 %v1716_v6, %v731_v4 }
 0x429   : > { %v1718_v8 = vpop.eup %1717 }
 0x42a   : > { %v788_v9 = vsub.f32 2.0, %v786_v7  ;;  %v787_v10 = vmul.f32 %v1718_v8, %v734_v5  ;;  %v1720_v16 = vpop.eup %1719  ;;  %v1478_v5 = vld [vmem:[%s2489_s19] ss:$0 sm:$0xff] }
 0x42b   : > { %v1722_v17 = vpop.eup %1721  ;;  %v924_v18 = vmul.f32 %v1720_v16, %v865_v62 }
 0x42c   : > { %v790_v11 = vmul.f32 %v1716_v6, %v788_v9  ;;  %v789_v12 = vsub.f32 2.0, %v787_v10  ;;  %v925_v19 = vmul.f32 %v1722_v17, %v868_v61  ;;  %v1724_v21 = vpop.eup %1723 }
 0x42d   : > { %v926_v20 = vsub.f32 2.0, %v924_v18  ;;  %v1726_v23 = vpop.eup %1725  ;;  %v1064_v24 = vmul.f32 %v1724_v21, %v1008_v63 }
 0x42e   : > { %v792_v13 = vmul.f32 %v790_v11, %v777_v57  ;;  %v791_v14 = vmul.f32 %v1718_v8, %v789_v12  ;;  %v927_v22 = vsub.f32 2.0, %v925_v19  ;;  %v1065_v27 = vmul.f32 %v1726_v23, %v1011_v1  ;;  %v1728_v35 = vpop.eup %1727 }
 0x42f   : > { %v928_v25 = vmul.f32 %v1720_v16, %v926_v20  ;;  %v1066_v32 = vsub.f32 2.0, %v1064_v24  ;;  %v1730_v37 = vpop.eup %1729  ;;  %v1204_v38 = vmul.f32 %v1728_v35, %v1148_v2 }
 0x430   : > { %794 = vst.msk [vmem:[#allocation4] sm:$0xff] %vm669_vm4, %v792_v13  ;;  %v793_v15 = vmul.f32 %v791_v14, %v780_v59  ;;  %v929_v30 = vmul.f32 %v1722_v17, %v927_v22  ;;  %v1067_v36 = vsub.f32 2.0, %v1065_v27  ;;  %v1205_v42 = vmul.f32 %v1730_v37, %v1151_v3 }
 0x431   : > { %v1068_v39 = vmul.f32 %v1724_v21, %v1066_v32  ;;  %v1206_v48 = vsub.f32 2.0, %v1204_v38 }
 0x432   : > { %795 = vst.msk [vmem:[#allocation4 + $0x8] sm:$0xff] %vm669_vm4, %v793_v15  ;;  %v1069_v45 = vmul.f32 %v1726_v23, %v1067_v36  ;;  %v1207_v51 = vsub.f32 2.0, %v1205_v42 }
 0x433   : > { %v1208_v52 = vmul.f32 %v1728_v35, %v1206_v48 }
 0x434   : > { %v1209_v56 = vmul.f32 %v1730_v37, %v1207_v51 }
 0x453   : > { %v915_v26 = vpop.f32.mrb[12].mxu0 }
 0x454   : > { %v930_v28 = vmul.f32 %v928_v25, %v915_v26  ;;  %v1557_v29 = vpop.f32.mrb[13].mxu0 }
 0x455   : > { %v918_v31 = vpop.f32.mrb[14].mxu0 }
 0x456   : > { %v931_v33 = vmul.f32 %v929_v30, %v918_v31  ;;  %934 = vrot.lane.b32.xlu0 %v930_v28, %s1954_s10  ;;  %v1558_v34 = vpop.f32.mrb[15].mxu0 }
 0x458   : > { %936 = vrot.lane.b32.xlu1 %v931_v33, %s1954_s10 }
 0x45b   : > { %v1055_v40 = vpop.f32.mrb[16].mxu0 }
 0x45c   : > { %v1070_v43 = vmul.f32 %v1068_v39, %v1055_v40  ;;  %v1569_v44 = vpop.f32.mrb[17].mxu0 }
 0x45d   : > { %v1058_v46 = vpop.f32.mrb[18].mxu0 }
 0x45e   : > { %v1071_v49 = vmul.f32 %v1069_v45, %v1058_v46  ;;  %1074 = vrot.lane.b32.xlu1 %v1070_v43, %s1955_s23  ;;  %v1570_v50 = vpop.f32.mrb[19].mxu0 }
 0x460   : > { %1076 = vrot.lane.b32.xlu0 %v1071_v49, %s1955_s23 }
 0x463   : > { %v1195_v53 = vpop.f32.mrb[20].mxu0 }
 0x464   : > { %v1210_v54 = vmul.f32 %v1208_v52, %v1195_v53  ;;  %v1581_v55 = vpop.f32.mrb[21].mxu0 }
 0x465   : > { %v1198_v57 = vpop.f32.mrb[22].mxu0 }
 0x466   : > { %v1211_v58 = vmul.f32 %v1209_v56, %v1198_v57  ;;  %1214 = vrot.lane.b32.xlu1 %v1210_v54, %s1956_s29  ;;  %v1582_v59 = vpop.f32.mrb[23].mxu0 }
 0x468   : > { %1216 = vrot.lane.b32.xlu0 %v1211_v58, %s1956_s29 }
 0x4c8   : > { %v935_v60 = vpop.permute.xlu0 %934 }
 0x4c9   : > { %941 = vst.msk [vmem:[#allocation4] sm:$0xff] %vm940_vm6, %v935_v60 }
 0x4ca   : > { %v937_v61 = vpop.permute.xlu1 %936 }
 0x4cb   : > { %942 = vst.msk [vmem:[#allocation4 + $0x8] sm:$0xff] %vm940_vm6, %v937_v61 }
 0x4d0   : > { %v1075_v0 = vpop.permute.xlu1 %1074 }
 0x4d1   : > { %1081 = vst.msk [vmem:[#allocation4] sm:$0xff] %vm1080_vm7, %v1075_v0 }
 0x4d2   : > { %v1077_v62 = vpop.permute.xlu0 %1076 }
 0x4d3   : > { %1082 = vst.msk [vmem:[#allocation4 + $0x8] sm:$0xff] %vm1080_vm7, %v1077_v62 }
 0x4d8   : > { %v1215_v63 = vpop.permute.xlu1 %1214 }
 0x4d9   : > { %1221 = vst.msk [vmem:[#allocation4] sm:$0xff] %vm1220_vm8, %v1215_v63 }
 0x4da   : > { %v1217_v1 = vpop.permute.xlu0 %1216 }
 0x4db   : > { %1222 = vst.msk [vmem:[#allocation4 + $0x8] sm:$0xff] %vm1220_vm8, %v1217_v1 }
 0x4e0   : > { %v1223_v2 = vld [vmem:[#allocation4] sm:$0xff] }
 0x4e2   : > { %v1224_v3 = vld [vmem:[#allocation4 + $0x8] sm:$0xff] }
 0x4e3   : > { %v1225_v4 = vpack.c.bf16 %v1224_v3, %v1223_v2 }
 0x4e5   : > { %1588 = vmatmul.mubr.msk.bf16.vlgmr.msra.gmra.mrb[20].mxu1 %vm619_vm2, %v1225_v4 }
 0x5b8   : > { %v1286_v6 = vpop.f32.mrb[20].mxu1 }
 0x5b9   : > { %v1287_v7 = vadd.f32 %v1478_v5, %v1286_v6  ;;  %v1589_v8 = vpop.f32.mrb[21].mxu1 }
 0x5ba   : > { %v1289_v9 = vpop.f32.mrb[22].mxu1 }
 0x5bb   : > { %1293 = vst.msk [vmem:[%s461_s22] sm:$0xff] %vm619_vm2, %v1287_v7  ;;  %v1290_v10 = vadd.f32 %v1478_v5, %v1289_v9  ;;  %v1590_v11 = vpop.f32.mrb[23].mxu1 }
 0x5bd   : > { %1294 = vst.msk [vmem:[%s461_s22 + $0x8] sm:$0xff] %vm619_vm2, %v1290_v10 }
 0x5be   : > { %1860 = shalt.err (!%p1857_p7)
}
 0x5bf   : > { %s1861_s6 = scalar_lea.hbm %s2387_s13, 256  ;;  %s1865_s24 = scalar_lea.hbm %s2490_s0, 512 }
 0x5c0   : > { %p1862_p13 = scmp.ne.s32.totalorder %s2387_s13, %s1861_s6  ;;  %p1866_p12 = scmp.lt.u32.totalorder %s2387_s13, %s2490_s0 }
 0x5c1   : > { %p1867_p11 = scmp.lt.u32.totalorder %s1865_s24, %s1861_s6  ;;  %p1869_p2 = scmp.lt.u32.totalorder %s1861_s6, %s2387_s13 }
 0x5c2   : > { %p1863_p1 = pnand %p1862_p13, %p2491_p6 }
 0x5c3   : > { %p1868_p0 = por %p1867_p11, %p1866_p12 }
 0x5c4   : > { %p1864_p8 = pneg %p1863_p1 }
 0x5c5   : > { %p1870_p10 = por %p1869_p2, %p1868_p0 }
 0x5c7   : > { %p1871_p3 = pnand %p1870_p10, %p1864_p8 }
 0x5c9   : > { %1874 = shalt.err (!%p1871_p3)
}
 0x5ca   : > { %s1958_s19 = smov 128  }
 0x5cb   : > { %1603 = dma.vmem_to_hbm [thread:$0]  (%p2491_p6), %s2381_s12, 256, %s2387_s13, %s1296_s16, %s1958_s19, %s1958_s19, %s1954_s10  }
 0x5cc PF: > { %s2492_s22 = sld [smem:[#allocation19_spill]]  ;;  %s2493_s9 = sld [smem:[#allocation21_spill]] }
 0x5cd   : > { %p2495_p9 = scmp.ge.s32.totalorder %s1941_s18, 2 }
 0x5d2   : > { %s1326_s11 = sand.u32 1, %s2492_s22   ;;  %p2494_p4 = scmp.ne.s32.totalorder %s2493_s9, 0 }
 0x5d3   : > { %s1327_s27 = scalar_lea.sflag [#allocation7], %s1326_s11 }
 0x5d4   : > { %p1620_p5 = pnand %p2495_p9, %p2494_p4 }
 0x5d6   : > { %1916 = dma.done.wait (!%p1620_p5), %s1327_s27, 256  }
 0x5d7   : > { %1918 = vsyncadd (!%p1620_p5), %s1327_s27, 4294967040  ;;  %s30_s18 = sadd.s32 1, %s1941_s18   ;;  %s2496_s30 = sld [smem:[#allocation20_spill]] }
 0x5d8   : > { %p27_p7 = scmp.ge.s32.totalorder %s30_s18, 4   ;;  %s2497_s15 = sld [smem:[#allocation23_spill]] }
 0x5d9   : > { %s2498_s25 = sld [smem:[#allocation22_spill]]  ;;  %s2499_s13 = smov %s1925_s14 }
 0x5da   : > { %s2501_s16 = smov %s1937_s17  ;;  %29 = sbr.rel (!%p27_p7) target bundleno = 15 (0xf), region = 130 }
 0x5dd   : > { %s2500_s14 = smov %s2496_s30 }
 0x5df   : > { %s2502_s17 = smov %s2498_s25 }
 0x5e1   :  { %1332 = vsyncpa [#allocation6], 1 }
 0x5e2   :  { %1334 = vsyncpa [#allocation6 + $0x1], 1 }
 0x5e3   :  { %1335 = vsyncpa [#allocation9], 1 }
 0x5e4   :  { %1337 = vsyncpa [#allocation9 + $0x1], 1 }
 0x5e5   :  { %1338 = vsyncpa [#allocation12], 1 }
 0x5e6   :  { %1339 = vsyncpa [#allocation7], 1 }
 0x5e7   :  { %1341 = vsyncpa [#allocation7 + $0x1], 1 }

// kernel: tpu_custom_call.1
= control target key start
LH: loop header
LB: loop body
LE: loop exit
PB: predicated region body
PF: predicated region fallthrough
CT: control target
= control target key end

     0   :  { %s2438_s0 = inlined_call_operand.hbm [shape: bf16[2,16,32], index: 0, kind: input, shape index: {}]   ;;  %s2439_s1 = inlined_call_operand.hbm [shape: bf16[2,8,16], index: 1, kind: input, shape index: {}]   ;;  %s2440_s2 = inlined_call_operand.hbm [shape: bf16[32,32], index: 2, kind: input, shape index: {}]   ;;  %s2441_s3 = inlined_call_operand.vmem [shape: f32[1,32], index: 3, kind: input, shape index: {}]   ;;  %s2442_s4 = inlined_call_operand.vmem [shape: bf16[16,32], index: 4, kind: input, shape index: {}]   ;;  %s2443_s5 = inlined_call_operand.vmem [shape: f32[1,32], index: 5, kind: input, shape index: {}]   ;;  %s2444_s6 = inlined_call_operand.hbm [shape: bf16[16,32], index: 6, kind: input, shape index: {}]   ;;  %s2445_s7 = inlined_call_operand.vmem [shape: f32[1,32], index: 7, kind: input, shape index: {}]   ;;  %s2446_s8 = inlined_call_operand.vmem [shape: bf16[32,32], index: 8, kind: input, shape index: {}]   ;;  %s2447_s9 = inlined_call_operand.vmem [shape: f32[1,32], index: 9, kind: input, shape index: {}]   ;;  %s2448_s10 = inlined_call_operand.hbm [shape: f32[2,16,32], index: 10, kind: output, shape index: {}]  }
   0x1   :  { %2460 = sst [smem:[#allocation24_spill]] %s2438_s0 }
   0x2   :  { %2461 = sst [smem:[#allocation25_spill]] %s2440_s2 }
   0x3   :  { %2462 = sst [smem:[#allocation26_spill]] %s2444_s6 }
   0x4   :  { %2463 = sst [smem:[#allocation27_spill]] %s2447_s9 }
   0x5   :  { %2464 = sst [smem:[#allocation28_spill]] %s2448_s10 }
   0x6   :  { %15 = vsyncpa [#allocation6], 0 }
   0x7   :  { %17 = vsyncpa [#allocation6 + $0x1], 0 }
   0x8   :  { %18 = vsyncpa [#allocation9], 0 }
   0x9   :  { %20 = vsyncpa [#allocation9 + $0x1], 0 }
   0xa   :  { %21 = vsyncpa [#allocation12], 0 }
   0xb   :  { %22 = vsyncpa [#allocation7], 0 }
   0xc   :  { %24 = vsyncpa [#allocation7 + $0x1], 0  ;;  %s2014_s13 = smov 0   ;;  %s2016_s14 = smov 0  }
   0xd   :  { %s2018_s15 = smov 0   ;;  %s2020_s16 = smov 0  }
   0xe   :  { %s2022_s17 = smov 0   ;;  %s2024_s18 = smov 0  }
   0xf LB: > { %2465 = sst [smem:[#allocation19_spill]] %s1921_s13  ;;  %s2045_s19 = sadd.s32 4294967295, %s1941_s18   ;;  %s1941_s18 = sphi %s2024_s18, %s30_s18   ;;  %s1937_s17 = sphi %s2022_s17, %s2502_s17   ;;  %s1933_s16 = sphi %s2020_s16, %s2501_s16   ;;  %s1929_s15 = sphi %s2018_s15, %s2497_s15   ;;  %s1925_s14 = sphi %s2016_s14, %s2500_s14   ;;  %s1921_s13 = sphi %s2014_s13, %s2499_s13  }
  0x10   : > { %2466 = sst [smem:[#allocation20_spill]] %s1929_s15  ;;  %s1441_s20 = sadd.s32 4294967294, %s1941_s18  }
  0x11   : > { %p64_p0 = scmp.ne.s32.totalorder %s1925_s14, %s1921_s13  ;;  %p2450_p1 = scmp.eq.s32.totalorder %s2045_s19, 0 }
  0x12   : > { %p290_p3 = scmp.eq.s32.totalorder %s1441_s20, 1  ;;  %p1442_p5 = scmp.ge.s32.totalorder %s1941_s18, 1 }
  0x13   : > { %p2054_p4 = por %p2450_p1, %p64_p0  ;;  %p297_p7 = scmp.lt.s32.totalorder %s1941_s18, 3 }
  0x14   : > { %p2059_p6 = por %p290_p3, %p64_p0  ;;  %s1943_s24 = smov [#allocation10]  }
  0x15   : > { %s2467_s21 = scalar_select %p2054_p4, 1, 0 }
  0x16   : > { %s2468_s22 = scalar_select %p2059_p6, 1, 0 }
  0x17   : > { %p2064_p8 = pnand %p1442_p5, %p297_p7  ;;  %s309_s25 = sshll.u32 %s1943_s24, 4  ;;  %s2068_s25 = int_to_ptr.vmem [resolvable:$true] %s309_s25 }
  0x18   : > { %2469 = sst [smem:[#allocation21_spill]] %s2468_s22  ;;  %s1944_s27 = smov [#allocation11]  }
  0x19   : > { %s2470_s23 = scalar_select %p2064_p8, 1, 0 }
  0x1a   : > { %p1605_p9 = pneg %p2064_p8  ;;  %s331_s28 = sshll.u32 %s1944_s27, 4  ;;  %s2079_s28 = int_to_ptr.vmem [resolvable:$true] %s331_s28 }
  0x1b   : > { %s2472_s2 = sld [smem:[#allocation25_spill]] }
  0x1c   : > { %p2075_p11 = pnand %p1605_p9, %p2450_p1 }
  0x1e   : > { %p1733_p13 = pneg %p2075_p11 }
  0x21   : > { %s1731_s11 = scalar_lea.hbm %s2472_s2, 256 }
  0x22   : > { %p1732_p12 = scmp.ne.s32.totalorder %s2472_s2, %s1731_s11  ;;  %p1738_p5 = scmp.lt.u32.totalorder %s1731_s11, %s2472_s2 }
  0x24   : > { %p1734_p0 = pnand %p1733_p13, %p1732_p12 }
  0x26   : > { %p1735_p3 = pneg %p1734_p0 }
  0x28   : > { %p1740_p7 = pnand %p1738_p5, %p1735_p3 }
  0x2a   : > { %1743 = shalt.err (!%p1740_p7)
}
  0x2b   : > { %s1744_s27 = scalar_lea.vmem %s2068_s25, 256  ;;  %p1752_p2 = scmp.lt.s32.totalorder %s2068_s25, %s2068_s25 }
  0x2c   : > { %p1745_p9 = scmp.ne.s32.totalorder %s2068_s25, %s1744_s27  ;;  %p1753_p12 = scmp.lt.s32.totalorder %s1744_s27, %s1744_s27 }
  0x2e   : > { %p1747_p10 = pnand %p1745_p9, %p1733_p13  ;;  %p1754_p0 = por %p1753_p12, %p1752_p2 }
  0x30   : > { %p1748_p1 = pneg %p1747_p10 }
  0x32   : > { %p1755_p6 = pnand %p1754_p0, %p1748_p1 }
  0x34   : > { %1758 = shalt.err (!%p1755_p6)
}
  0x35   : > { %s2453_s22 = smov 64   ;;  %s2454_s29 = smov 4  }
  0x36   : > { %1608 = dma.hbm_to_vmem [thread:$0]  (!%p2075_p11), %s2472_s2, 256, %s2068_s25, [#allocation9], %s2453_s22, %s2453_s22, %s2454_s29  }
  0x37   : > { %s2473_s6 = sld [smem:[#allocation26_spill]] }
  0x3d   : > { %s1759_s24 = scalar_lea.hbm %s2473_s6, 128 }
  0x3e   : > { %p1760_p1 = scmp.ne.s32.totalorder %s2473_s6, %s1759_s24  ;;  %p1766_p10 = scmp.lt.u32.totalorder %s1759_s24, %s2473_s6 }
  0x40   : > { %p1762_p2 = pnand %p1760_p1, %p1733_p13 }
  0x42   : > { %p1763_p6 = pneg %p1762_p2 }
  0x44   : > { %p1768_p3 = pnand %p1766_p10, %p1763_p6 }
  0x46   : > { %1771 = shalt.err (!%p1768_p3)
}
  0x47   : > { %s1772_s25 = scalar_lea.vmem %s2079_s28, 128  ;;  %p1780_p12 = scmp.lt.s32.totalorder %s2079_s28, %s2079_s28 }
  0x48   : > { %p1773_p5 = scmp.ne.s32.totalorder %s2079_s28, %s1772_s25  ;;  %p1781_p0 = scmp.lt.s32.totalorder %s1772_s25, %s1772_s25 }
  0x4a   : > { %p1775_p7 = pnand %p1773_p5, %p1733_p13  ;;  %p1782_p1 = por %p1781_p0, %p1780_p12 }
  0x4c   : > { %p1776_p9 = pneg %p1775_p7 }
  0x4e   : > { %p1783_p2 = pnand %p1782_p1, %p1776_p9 }
  0x50   : > { %1786 = shalt.err (!%p1783_p2)
}
  0x51   : > { %1611 = dma.hbm_to_vmem [thread:$0]  (!%p2075_p11), %s2473_s6, 128, %s2079_s28, [#allocation12], %s2453_s22, %s2453_s22, %s2454_s29  }
  0x52   : > { %s42_s13 = sadd.s32 1, %s1937_s17  ;;  %s51_s26 = sadd.s32 1, %s1929_s15 }
  0x53   : > { %p44_p13 = scmp.ge.s32.totalorder %s42_s13, 2  ;;  %p58_p6 = scmp.ne.s32.totalorder %s1929_s15, %s1925_s14 }
  0x54   : > { %p59_p10 = scmp.eq.s32.totalorder %s1941_s18, 0  ;;  %p1625_p3 = scmp.lt.s32.totalorder %s1941_s18, 2 }
  0x55   : > { %s2504_s13 = smov (%p44_p13, %s42_s13), 0  ;;  %p2475_p7 = scmp.eq.s32.totalorder %s2045_s19, 1 }
  0x56   : > { %2474 = sst [smem:[#allocation22_spill]] %s2504_s13  ;;  %p60_p5 = por %p59_p10, %p58_p6 }
  0x57   : > { %p2149_p9 = por %p2475_p7, %p58_p6  ;;  %s46_s11 = ssub.s32 %s1937_s17, %s2504_s13 }
  0x58   : > { %s2156_s12 = sand.u32 1, %s1929_s15   ;;  %p49_p11 = scmp.eq.s32.totalorder %s46_s11, 0 }
  0x59   : > { %s2476_s30 = scalar_select %p2149_p9, 1, 0 }
  0x5a   : > { %s1446_s28 = sshll.u32 %s2156_s12, 3  ;;  %s1487_s20 = sshll.u32 %s1937_s17, 7 }
  0x5b   : > { %s2161_s24 = scalar_select %p49_p11, %s1929_s15, %s51_s26  }
  0x5c   : > { %s2478_s0 = sld [smem:[#allocation24_spill]]  ;;  %s358_s10 = scalar_lea.vmem [#allocation5], %s1446_s28 }
  0x5d   : > { %2477 = sst [smem:[#allocation23_spill]] %s2161_s24  ;;  %s367_s22 = sshll.u32 %s358_s10, 4  ;;  %s2174_s22 = int_to_ptr.vmem [resolvable:$true] %s367_s22 }
  0x5e   : > { %p2170_p12 = pnand %p1625_p3, %p60_p5  ;;  %s355_s11 = scalar_lea.sflag [#allocation6], %s2156_s12 }
  0x60   : > { %p1789_p1 = pneg %p2170_p12 }
  0x62   : > { %s2166_s9 = scalar_lea.hbm %s2478_s0, %s1487_s20  ;;  %s1792_s25 = scalar_lea.hbm %s2478_s0, 256 }
  0x63   : > { %s1787_s27 = scalar_lea.hbm %s2166_s9, 128  ;;  %p1793_p6 = scmp.lt.u32.totalorder %s2166_s9, %s2478_s0 }
  0x64   : > { %p1788_p0 = scmp.ne.s32.totalorder %s2166_s9, %s1787_s27  ;;  %p1794_p10 = scmp.lt.u32.totalorder %s1792_s25, %s1787_s27 }
  0x65   : > { %p1796_p5 = scmp.lt.u32.totalorder %s1787_s27, %s2166_s9 }
  0x66   : > { %p1790_p2 = pnand %p1789_p1, %p1788_p0  ;;  %p1795_p3 = por %p1794_p10, %p1793_p6 }
  0x68   : > { %p1791_p13 = pneg %p1790_p2  ;;  %p1797_p7 = por %p1796_p5, %p1795_p3 }
  0x6a   : > { %p1798_p11 = pnand %p1797_p7, %p1791_p13 }
  0x6c   : > { %1801 = shalt.err (!%p1798_p11)
}
  0x6d   : > { %s1802_s26 = scalar_lea.vmem %s2174_s22, 128  ;;  %s1947_s28 = smov [#allocation5]  }
  0x6e   : > { %p1803_p0 = scmp.ne.s32.totalorder %s2174_s22, %s1802_s26  ;;  %s1807_s20 = sshll.u32 %s1947_s28, 4  ;;  %s1808_s20 = int_to_ptr.vmem [resolvable:$false] %s1807_s20 }
  0x6f   : > { %s1809_s2 = scalar_lea.vmem %s1808_s20, 256  ;;  %p1810_p4 = scmp.lt.s32.totalorder %s2174_s22, %s1808_s20 }
  0x70   : > { %p1805_p2 = pnand %p1803_p0, %p1789_p1  ;;  %p1811_p6 = scmp.lt.s32.totalorder %s1809_s2, %s1802_s26 }
  0x72   : > { %p1806_p9 = pneg %p1805_p2  ;;  %p1812_p10 = por %p1811_p6, %p1810_p4 }
  0x74   : > { %p1813_p3 = pnand %p1812_p10, %p1806_p9 }
  0x76   : > { %1816 = shalt.err (!%p1813_p3)
}
  0x77   : > { %s2480_s27 = smov 4   ;;  %s2481_s25 = smov 64  }
  0x78   : > { %1615 = dma.hbm_to_vmem [thread:$0]  (!%p2170_p12), %s2166_s9, 128, %s2174_s22, %s355_s11, %s2481_s25, %s2481_s25, %s2480_s27  }
  0x79   : > { %s1449_s10 = sshll.u32 %s2156_s12, 2  ;;  %s1450_s28 = sshll.u32 %s1937_s17, 6 }
  0x7a   : > { %s2213_s2 = scalar_lea.hbm %s2439_s1, %s1450_s28  ;;  %s381_s0 = scalar_lea.vmem [#allocation8], %s1449_s10 }
  0x7b   : > { %s388_s6 = sshll.u32 %s381_s0, 4  ;;  %s2482_s13 = sand.u32 1, %s1941_s18   ;;  %s389_s6 = int_to_ptr.vmem [resolvable:$true] %s388_s6 }
  0x7c   : > { %s378_s24 = scalar_lea.sflag [#allocation9], %s2482_s13  ;;  %s1817_s15 = scalar_lea.hbm %s2213_s2, 64 }
  0x7d   : > { %p1818_p4 = scmp.ne.s32.totalorder %s2213_s2, %s1817_s15  ;;  %s1822_s9 = scalar_lea.hbm %s2439_s1, 128 }
  0x7e   : > { %p1823_p5 = scmp.lt.u32.totalorder %s2213_s2, %s2439_s1  ;;  %p1824_p7 = scmp.lt.u32.totalorder %s1822_s9, %s1817_s15 }
  0x7f   : > { %p1820_p9 = pnand %p1818_p4, %p1789_p1  ;;  %p1826_p0 = scmp.lt.u32.totalorder %s1817_s15, %s2213_s2 }
  0x80   : > { %p1825_p11 = por %p1824_p7, %p1823_p5 }
  0x81   : > { %p1821_p13 = pneg %p1820_p9 }
  0x82   : > { %p1827_p2 = por %p1826_p0, %p1825_p11 }
  0x84   : > { %p1828_p6 = pnand %p1827_p2, %p1821_p13 }
  0x86   : > { %1831 = shalt.err (!%p1828_p6)
}
  0x87   : > { %s1832_s0 = scalar_lea.vmem %s389_s6, 64  ;;  %s1948_s13 = smov [#allocation8]  }
  0x88   : > { %p1833_p10 = scmp.ne.s32.totalorder %s389_s6, %s1832_s0  ;;  %s1837_s25 = sshll.u32 %s1948_s13, 4  ;;  %s1838_s25 = int_to_ptr.vmem [resolvable:$false] %s1837_s25 }
  0x89   : > { %s1839_s10 = scalar_lea.vmem %s1838_s25, 128  ;;  %p1840_p9 = scmp.lt.s32.totalorder %s389_s6, %s1838_s25 }
  0x8a   : > { %p1835_p3 = pnand %p1833_p10, %p1789_p1  ;;  %p1841_p8 = scmp.lt.s32.totalorder %s1839_s10, %s1832_s0 }
  0x8c   : > { %p1836_p4 = pneg %p1835_p3  ;;  %p1842_p5 = por %p1841_p8, %p1840_p9 }
  0x8e   : > { %p1843_p7 = pnand %p1842_p5, %p1836_p4 }
  0x90   : > { %1846 = shalt.err (!%p1843_p7)
}
  0x91   : > { %1618 = dma.hbm_to_vmem [thread:$0]  (!%p2170_p12), %s2213_s2, 64, %s389_s6, %s378_s24  }
  0x92   : > { %p2483_p13 = scmp.ne.s32.totalorder %s2470_s23, 0 }
  0x93   : > { %s2239_s15 = sand.u32 (!%p2483_p13), 1, %s1925_s14   ;;  %p2484_p1 = scmp.ne.s32.totalorder (!%p2483_p13), %s2467_s21, 0 }
  0x94   : > { %397 = sbr.rel (%p2483_p13) target bundleno = 1484 (0x5cc), region = 60  ;;  %s1452_s28 = sshll.u32 (!%p2483_p13), %s2239_s15, 3 }
  0x95   : > { %s400_s26 = scalar_lea.sflag (!%p2483_p13), [#allocation6], %s2239_s15  ;;  %s403_s20 = scalar_lea.vmem (!%p2483_p13), [#allocation5], %s1452_s28 }
  0x9b   : > { %1900 = dma.done.wait (%p2484_p1), %s400_s26, 128  }
  0x9c   : > { %1902 = vsyncadd (%p2484_p1), %s400_s26, 4294967168  ;;  %s408_s6 = sand.u32 1, %s2045_s19   ;;  %s1453_s23 = sshll.u32 %s2239_s15, 2 }
  0x9d   : > { %s409_s29 = scalar_lea.sflag [#allocation9], %s408_s6  ;;  %s412_s24 = scalar_lea.vmem [#allocation8], %s1453_s23 }
  0x9e   : > { %1904 = dma.done.wait (%p2484_p1), %s409_s29, 64  }
  0x9f   : > { %1906 = vsyncadd (%p2484_p1), %s409_s29, 4294967232  ;;  %p2485_p8 = scmp.eq.s32.totalorder %s2045_s19, 0 }
  0xa1   : > { %1908 = dma.done.wait (%p2485_p8), [#allocation9], 256   ;;  %p2486_p12 = pmov %p2485_p8 }
  0xa2   : > { %p2487_p11 = pmov %p2485_p8 }
  0xa3   : > { %1910 = vsyncadd (%p2486_p12), [#allocation9], 4294967040 }
  0xa4   : > { %1912 = dma.done.wait (%p2487_p11), [#allocation12], 128   ;;  %p2488_p0 = pmov %p2485_p8 }
  0xa5   : > { %v1949_v0 = vmov 0.0   ;;  %vm1950_vm0 = vmmov 0   ;;  %v1690_v1 = vld [vmem:[%s2442_s4] sm:$0xff]   ;;  %v469_v2 = vld [vmem:[%s412_s24] sm:$0xf]  ;;  %vm485_vm1 = vcmask 130048  }
  0xa6   : > { %1914 = vsyncadd (%p2488_p0), [#allocation12], 4294967168  ;;  %1515 = vmatprep.subr.bf16.mxu0 %v1949_v0  ;;  %1517 = vmatprep.mubr.msk.bf16.mxu0 %vm1950_vm0, %v1949_v0  ;;  %v1691_v3 = vld [vmem:[#allocation10] sm:$0xff]   ;;  %v1692_v4 = vld [vmem:[#allocation10 + $0x8] sm:$0xff]   ;;  %vm619_vm2 = vcmask 261120   ;;  %vm585_vm3 = vcmask 257024  }
  0xa7   : > { %1521 = vmatprep.subr.bf16.mxu1 %v1949_v0  ;;  %1523 = vmatprep.mubr.msk.bf16.mxu1 %vm1950_vm0, %v1949_v0  ;;  %v1693_v5 = vld [vmem:[%s403_s20] sm:$0xff]   ;;  %vm669_vm4 = vcmask 64512   ;;  %s1951_s11 = smov 112   ;;  %s1952_s27 = smov 120   ;;  %vm739_vm5 = vcmask 1043456   ;;  %vm940_vm6 = vcmask 130112  }
  0xa8   : > { %1516 = vmatpush3.bf16.msra.mxu0 %v1690_v1  ;;  %v1694_v6 = vld [vmem:[#allocation11] sm:$0xff]   ;;  %s1953_s0 = smov 104   ;;  %s1954_s10 = smov 8   ;;  %vm1080_vm7 = vcmask 195712   ;;  %vm1220_vm8 = vcmask 261312  }
  0xa9   : > { %1527 = vmatprep.subr.bf16.mxu0 %v1949_v0  ;;  %1522 = vmatpush3.bf16.msra.mxu1 %v1694_v6  ;;  %v1457_v7 = vld [vmem:[%s2443_s5] ss:$0 sm:$0xff]  ;;  %s1955_s23 = smov 16   ;;  %s1956_s29 = smov 24  }
  0xaa   : > { %1535 = vmatprep.subr.bf16.mxu1 %v1949_v0  ;;  %v1463_v14 = vld [vmem:[%s2441_s3] ss:$0 sm:$0xff]  ;;  %s1456_s24 = sshll.u32 %s2239_s15, 4  ;;  %s2489_s19 = sld [smem:[#allocation27_spill]] }
  0xab   : > { %1518 = vmatmul.mubr.msk.bf16.vlgmr.msra.gmra.mrb[0].mxu0 %vm485_vm1, %v469_v2  ;;  %v1460_v27 = vld [vmem:[%s2445_s7] ss:$0 sm:$0xff]  ;;  %s461_s22 = scalar_lea.vmem [#allocation13], %s1456_s24  ;;  %s1488_s9 = sshll.u32 %s1933_s16, 8 }
  0xac   : > { %1528 = vmatpush3.bf16.msra.mxu0 %v1691_v3  ;;  %1531 = vmatprep.mubr.msk.bf16.mxu0 %vm1950_vm0, %v1949_v0  ;;  %s1311_s12 = sshll.u32 %s461_s22, 4  ;;  %s1296_s16 = scalar_lea.sflag [#allocation7], %s2239_s15  ;;  %s2381_s12 = int_to_ptr.vmem [resolvable:$true] %s1311_s12 }
  0xad   : > { %1529 = vmatprep.subr.bf16.mxu0 %v1949_v0  ;;  %1524 = vmatmul.mubr.msk.bf16.vlgmr.msra.gmra.mrb[0].mxu1 %vm485_vm1, %v469_v2  ;;  %s1847_s25 = scalar_lea.vmem %s2381_s12, 256  ;;  %p2491_p6 = scmp.ne.s32.totalorder %s2476_s30, 0 }
  0xae   : > { %1537 = vmatprep.mubr.msk.bf16.mxu1 %vm1950_vm0, %v1949_v0  ;;  %p1848_p2 = scmp.ne.s32.totalorder %s2381_s12, %s1847_s25  ;;  %s1957_s28 = smov [#allocation13]  }
  0xaf   : > { %s1851_s26 = sshll.u32 %s1957_s28, 4  ;;  %s1852_s26 = int_to_ptr.vmem [resolvable:$false] %s1851_s26 }
  0xb0   : > { %1530 = vmatpush3.bf16.msra.mxu0 %v1692_v4  ;;  %p1849_p10 = pnand %p1848_p2, %p2491_p6  ;;  %s1853_s20 = scalar_lea.vmem %s1852_s26, 512 }
  0xb1   : > { %1541 = vmatprep.subr.bf16.mxu0 %v1949_v0  ;;  %p1854_p4 = scmp.lt.s32.totalorder %s2381_s12, %s1852_s26  ;;  %p1855_p9 = scmp.lt.s32.totalorder %s1853_s20, %s1847_s25 }
  0xb2   : > { %p1850_p3 = pneg %p1849_p10 }
  0xb3   : > { %1532 = vmatmul.mubr.msk.bf16.vlgmr.msra.gmra.mrb[4].mxu0 %vm619_vm2, %v1693_v5  ;;  %p1856_p5 = por %p1855_p9, %p1854_p4 }
  0xb4   : > { %1543 = vmatprep.mubr.msk.bf16.mxu0 %vm1950_vm0, %v1949_v0 }
  0xb5   : > { %p1857_p7 = pnand %p1856_p5, %p1850_p3 }
 0x17e   : > { %v523_v8 = vpop.f32.mrb[0].mxu0 }
 0x17f   : > { %v524_v9 = vadd.f32 %v1457_v7, %v523_v8  ;;  %v1519_v10 = vpop.f32.mrb[1].mxu0 }
 0x180   : > { %v526_v11 = vpop.f32.mrb[2].mxu0  ;;  %v578_v28 = vpop.f32.mrb[0].mxu1 }
 0x181   : > { %v584_v12 = vpack.c.bf16 %v524_v9, %v524_v9  ;;  %v1520_v13 = vpop.f32.mrb[3].mxu0  ;;  %v579_v29 = vadd.f32 %v1460_v27, %v578_v28  ;;  %v1525_v30 = vpop.f32.mrb[1].mxu1 }
 0x182   : > { %v581_v31 = vpop.f32.mrb[2].mxu1 }
 0x183   : > { %586 = vst.msk [vmem:[#allocation2] sm:$0xf] %vm585_vm3, %v584_v12  ;;  %v587_v32 = vpack.c.bf16 %v579_v29, %v579_v29  ;;  %v1526_v33 = vpop.f32.mrb[3].mxu1 }
 0x185   : > { %588 = vst.msk [vmem:[#allocation3] sm:$0xf] %vm585_vm3, %v587_v32 }
 0x186   : > { %v657_v15 = vpop.f32.mrb[4].mxu0 }
 0x187   : > { %v658_v16 = vadd.f32 %v1463_v14, %v657_v15  ;;  %v1533_v17 = vpop.f32.mrb[5].mxu0 }
 0x188   : > { %v660_v18 = vpop.f32.mrb[6].mxu0 }
 0x189   : > { %v664_v19 = vmul.f32 0.35355338, %v658_v16  ;;  %v661_v20 = vadd.f32 %v1463_v14, %v660_v18  ;;  %v1534_v21 = vpop.f32.mrb[7].mxu0 }
 0x18a   : > { %v666_v22 = vld [vmem:[#allocation2] sm:$0xf] }
 0x18b   : > { %v665_v23 = vmul.f32 0.35355338, %v661_v20  ;;  %v674_v24 = vsel %vm669_vm4, %v666_v22, 0  ;;  %v1470_v25 = vcombine.low %v666_v22, %v666_v22 }
 0x18c   : > { %1536 = vmatpush3.bf16.xpose.msra.mxu1 %v674_v24  ;;  %v667_v34 = vld [vmem:[#allocation3] sm:$0xf] }
 0x18d   : > { %v668_v26 = vpack.c.bf16 %v665_v23, %v664_v19  ;;  %945 = vrot.lane.b32.xlu1 %v1470_v25, %s1951_s11  ;;  %802 = vrot.lane.b32.xlu0 %v1470_v25, %s1952_s27  ;;  %v741_v35 = vsel %vm739_vm5, %v667_v34, 0  ;;  %v1472_v51 = vcombine.low %v667_v34, %v667_v34 }
 0x18e   : > { %1547 = vmatprep.subr.bf16.mxu1 %v1949_v0  ;;  %1542 = vmatpush3.bf16.msra.mxu0 %v741_v35 }
 0x18f   : > { %1553 = vmatprep.subr.bf16.mxu0 %v1949_v0 }
 0x191   : > { %943 = vrot.lane.b32.xlu1 %v668_v26, %s1951_s11  ;;  %797 = vrot.lane.b32.xlu0 %v668_v26, %s1952_s27 }
 0x193   : > { %1538 = vmatmul.mubr.msk.bf16.vlgmr.msra.gmra.mrb[4].mxu1 %vm669_vm4, %v668_v26 }
 0x194   : > { %1549 = vmatprep.mubr.msk.bf16.mxu1 %vm1950_vm0, %v1949_v0 }
 0x195   : > { %1083 = vrot.lane.b32.xlu1 %v668_v26, %s1953_s0  ;;  %1085 = vrot.lane.b32.xlu0 %v1470_v25, %s1953_s0 }
 0x1ff   : > { %v803_v36 = vpop.permute.xlu0 %802  ;;  %v946_v38 = vpop.permute.xlu1 %945 }
 0x200   : > { %v808_v37 = vsel %vm669_vm4, %v803_v36, 0  ;;  %v951_v40 = vsel %vm669_vm4, %v946_v38, 0 }
 0x201   : > { %1548 = vmatpush3.bf16.xpose.msra.mxu1 %v808_v37 }
 0x202   : > { %1559 = vmatprep.subr.bf16.mxu1 %v1949_v0 }
 0x203   : > { %v798_v39 = vpop.permute.xlu0 %797  ;;  %v944_v42 = vpop.permute.xlu1 %943 }
 0x207   : > { %v1086_v41 = vpop.permute.xlu0 %1085  ;;  %v1084_v44 = vpop.permute.xlu1 %1083 }
 0x208   : > { %1550 = vmatmul.mubr.msk.bf16.vlgmr.msra.gmra.mrb[8].mxu1 %vm669_vm4, %v798_v39  ;;  %v1091_v43 = vsel %vm669_vm4, %v1086_v41, 0 }
 0x209   : > { %1560 = vmatpush3.bf16.xpose.msra.mxu1 %v951_v40  ;;  %1561 = vmatprep.mubr.msk.bf16.mxu1 %vm1950_vm0, %v1949_v0 }
 0x20a   : > { %1571 = vmatprep.subr.bf16.mxu1 %v1949_v0 }
 0x210   : > { %1562 = vmatmul.mubr.msk.bf16.vlgmr.msra.gmra.mrb[12].mxu1 %vm669_vm4, %v944_v42 }
 0x211   : > { %1572 = vmatpush3.bf16.xpose.msra.mxu1 %v1091_v43  ;;  %1573 = vmatprep.mubr.msk.bf16.mxu1 %vm1950_vm0, %v1949_v0 }
 0x212   : > { %1583 = vmatprep.subr.bf16.mxu1 %v1949_v0 }
 0x218   : > { %1574 = vmatmul.mubr.msk.bf16.vlgmr.msra.gmra.mrb[16].mxu1 %vm669_vm4, %v1084_v44 }
 0x219   : > { %1587 = vmatprep.mubr.msk.bf16.mxu1 %vm1950_vm0, %v1949_v0 }
 0x266   : > { %v710_v45 = vpop.f32.mrb[4].mxu1 }
 0x267   : > { %v1539_v46 = vpop.f32.mrb[5].mxu1  ;;  %v717_v47 = vsel %vm669_vm4, %v710_v45, -inf }
 0x268   : > { %718 = vmax.xlane.f32.xlu0 %v717_v47  ;;  %v713_v48 = vpop.f32.mrb[6].mxu1 }
 0x269   : > { %v1540_v49 = vpop.f32.mrb[7].mxu1  ;;  %v720_v50 = vsel %vm669_vm4, %v713_v48, -inf }
 0x26a   : > { %721 = vmax.xlane.f32.xlu1 %v720_v50 }
 0x27b   : > { %873 = vrot.lane.b32.xlu1 %v1472_v51, %s1952_s27 }
 0x2db   : > { %v844_v52 = vpop.f32.mrb[8].mxu1 }
 0x2dc   : > { %v1551_v53 = vpop.f32.mrb[9].mxu1  ;;  %v851_v54 = vsel %vm669_vm4, %v844_v52, -inf }
 0x2dd   : > { %852 = vmax.xlane.f32.xlu0 %v851_v54  ;;  %v847_v55 = vpop.f32.mrb[10].mxu1 }
 0x2de   : > { %v1552_v56 = vpop.f32.mrb[11].mxu1  ;;  %v854_v57 = vsel %vm669_vm4, %v847_v55, -inf }
 0x2e1   : > { %855 = vmax.xlane.f32.xlu0 %v854_v57 }
 0x2e3   : > { %v987_v58 = vpop.f32.mrb[12].mxu1 }
 0x2e4   : > { %v1563_v59 = vpop.f32.mrb[13].mxu1  ;;  %v994_v60 = vsel %vm669_vm4, %v987_v58, -inf }
 0x2e5   : > { %995 = vmax.xlane.f32.xlu1 %v994_v60  ;;  %v990_v61 = vpop.f32.mrb[14].mxu1 }
 0x2e6   : > { %v1564_v62 = vpop.f32.mrb[15].mxu1  ;;  %v997_v63 = vsel %vm669_vm4, %v990_v61, -inf }
 0x2e7   : > { %998 = vmax.xlane.f32.xlu0 %v997_v63 }
 0x2eb   : > { %v1127_v1 = vpop.f32.mrb[16].mxu1 }
 0x2ec   : > { %v1575_v2 = vpop.f32.mrb[17].mxu1  ;;  %v1134_v3 = vsel %vm669_vm4, %v1127_v1, -inf }
 0x2ed   : > { %1135 = vmax.xlane.f32.xlu1 %v1134_v3  ;;  %v1130_v4 = vpop.f32.mrb[18].mxu1 }
 0x2ee   : > { %v1576_v5 = vpop.f32.mrb[19].mxu1  ;;  %v1137_v6 = vsel %vm669_vm4, %v1130_v4, -inf }
 0x2ef   : > { %1138 = vmax.xlane.f32.xlu0 %v1137_v6 }
 0x2f5   : > { %v719_v7 = vpop.xlane.xlu0 %718 }
 0x2f6   : > { %v723_v8 = vsub.f32 %v710_v45, %v719_v7 }
 0x2f7   : > { %v722_v9 = vpop.xlane.xlu1 %721 }
 0x2f8   : > { %v725_v10 = vmul.f32 1.442695, %v723_v8  ;;  %v724_v11 = vsub.f32 %v713_v48, %v722_v9 }
 0x2fa   : > { %v727_v12 = vmul.f32 1.442695, %v724_v11  ;;  %1699 = vpow2.f32 %v725_v10 }
 0x2fb   : > { %v874_v13 = vpop.permute.xlu1 %873 }
 0x2fc   : > { %1701 = vpow2.f32 %v727_v12  ;;  %v879_v17 = vsel %vm739_vm5, %v874_v13, 0 }
 0x2fe   : > { %1153 = vrot.lane.b32.xlu1 %v1472_v51, %s1953_s0  ;;  %s2490_s0 = sld [smem:[#allocation28_spill]] }
 0x304   : > { %v2332_v14 = vpop.eup %1699  ;;  %s2387_s13 = scalar_lea.hbm %s2490_s0, %s1488_s9 }
 0x305   : > { %1013 = vrot.lane.b32.xlu0 %v1472_v51, %s1951_s11 }
 0x306   : > { %v2335_v15 = vpop.eup %1701 }
 0x307   : > { %v735_v16 = vpack.c.bf16 %v2335_v15, %v2332_v14  ;;  %v732_v56 = vsel %vm669_vm4, %v2335_v15, 0.0 }
 0x309   : > { %1544 = vmatmul.mubr.msk.bf16.vlgmr.msra.gmra.mrb[8].mxu0 %vm669_vm4, %v735_v16 }
 0x30a   : > { %1554 = vmatpush3.bf16.msra.mxu0 %v879_v17  ;;  %1555 = vmatprep.mubr.msk.bf16.mxu0 %vm1950_vm0, %v1949_v0 }
 0x30b   : > { %1565 = vmatprep.subr.bf16.mxu0 %v1949_v0 }
 0x36a   : > { %v853_v18 = vpop.xlane.xlu0 %852 }
 0x36b   : > { %v857_v19 = vsub.f32 %v844_v52, %v853_v18 }
 0x36d   : > { %v859_v20 = vmul.f32 1.442695, %v857_v19 }
 0x36e   : > { %v856_v21 = vpop.xlane.xlu0 %855 }
 0x36f   : > { %1703 = vpow2.f32 %v859_v20  ;;  %v858_v22 = vsub.f32 %v847_v55, %v856_v21  ;;  %v729_v55 = vsel %vm669_vm4, %v2332_v14, 0.0 }
 0x371   : > { %v861_v23 = vmul.f32 1.442695, %v858_v22 }
 0x372   : > { %v996_v24 = vpop.xlane.xlu1 %995 }
 0x373   : > { %1705 = vpow2.f32 %v861_v23  ;;  %v1000_v25 = vsub.f32 %v987_v58, %v996_v24 }
 0x374   : > { %v999_v26 = vpop.xlane.xlu0 %998 }
 0x375   : > { %v1002_v27 = vmul.f32 1.442695, %v1000_v25  ;;  %v1001_v28 = vsub.f32 %v990_v61, %v999_v26 }
 0x377   : > { %1707 = vpow2.f32 %v1002_v27  ;;  %v1004_v29 = vmul.f32 1.442695, %v1001_v28 }
 0x379   : > { %v1704_v30 = vpop.eup %1703  ;;  %1709 = vpow2.f32 %v1004_v29 }
 0x37a   : > { %v1136_v31 = vpop.xlane.xlu1 %1135  ;;  %v863_v32 = vsel %vm669_vm4, %v1704_v30, 0.0 }
 0x37b   : > { %v1140_v33 = vsub.f32 %v1127_v1, %v1136_v31  ;;  %864 = vadd.xlane.f32.xlu1 %v863_v32 }
 0x37c   : > { %v1139_v34 = vpop.xlane.xlu0 %1138 }
 0x37d   : > { %v1706_v35 = vpop.eup %1705  ;;  %v1142_v36 = vmul.f32 1.442695, %v1140_v33  ;;  %v1141_v37 = vsub.f32 %v1130_v4, %v1139_v34 }
 0x37e   : > { %v866_v38 = vsel %vm669_vm4, %v1706_v35, 0.0  ;;  %v869_v39 = vpack.c.bf16 %v1706_v35, %v1704_v30  ;;  %v1154_v48 = vpop.permute.xlu1 %1153 }
 0x37f   : > { %1711 = vpow2.f32 %v1142_v36  ;;  %v1144_v40 = vmul.f32 1.442695, %v1141_v37  ;;  %867 = vadd.xlane.f32.xlu0 %v866_v38  ;;  %v1159_v49 = vsel %vm739_vm5, %v1154_v48, 0 }
 0x380   : > { %1556 = vmatmul.mubr.msk.bf16.vlgmr.msra.gmra.mrb[12].mxu0 %vm669_vm4, %v869_v39  ;;  %v1014_v41 = vpop.permute.xlu0 %1013 }
 0x381   : > { %v1708_v42 = vpop.eup %1707  ;;  %1713 = vpow2.f32 %v1144_v40  ;;  %v1019_v43 = vsel %vm739_vm5, %v1014_v41, 0  ;;  %1567 = vmatprep.mubr.msk.bf16.mxu0 %vm1950_vm0, %v1949_v0  ;;  %v1697_v41 = vld [vmem:[%s2446_s8] sm:$0xff]  }
 0x382   : > { %1566 = vmatpush3.bf16.msra.mxu0 %v1019_v43  ;;  %v1006_v44 = vsel %vm669_vm4, %v1708_v42, 0.0  ;;  %1584 = vmatpush3.bf16.msra.mxu1 %v1697_v41 }
 0x383   : > { %v1710_v45 = vpop.eup %1709  ;;  %1007 = vadd.xlane.f32.xlu0 %v1006_v44  ;;  %1577 = vmatprep.subr.bf16.mxu0 %v1949_v0 }
 0x384   : > { %v1009_v46 = vsel %vm669_vm4, %v1710_v45, 0.0  ;;  %v1012_v47 = vpack.c.bf16 %v1710_v45, %v1708_v42  ;;  %1585 = vmatprep.subr.bf16.mxu1 %v1949_v0 }
 0x385   : > { %1010 = vadd.xlane.f32.xlu1 %v1009_v46 }
 0x388   : > { %1568 = vmatmul.mubr.msk.bf16.vlgmr.msra.gmra.mrb[16].mxu0 %vm669_vm4, %v1012_v47  ;;  %v1698_v47 = vld [vmem:[%s2446_s8 + $0x8] sm:$0xff]  }
 0x389   : > { %v1712_v50 = vpop.eup %1711  ;;  %1578 = vmatpush3.bf16.msra.mxu0 %v1159_v49  ;;  %1579 = vmatprep.mubr.msk.bf16.mxu0 %vm1950_vm0, %v1949_v0 }
 0x38a   : > { %v1146_v51 = vsel %vm669_vm4, %v1712_v50, 0.0  ;;  %1586 = vmatpush3.bf16.msra.mxu1 %v1698_v47 }
 0x38b   : > { %v1714_v52 = vpop.eup %1713  ;;  %1147 = vadd.xlane.f32.xlu0 %v1146_v51 }
 0x38c   : > { %v1149_v53 = vsel %vm669_vm4, %v1714_v52, 0.0  ;;  %v1152_v54 = vpack.c.bf16 %v1714_v52, %v1712_v50 }
 0x38d   : > { %1150 = vadd.xlane.f32.xlu1 %v1149_v53 }
 0x38f   : > { %730 = vadd.xlane.f32.xlu0 %v729_v55 }
 0x390   : > { %1580 = vmatmul.mubr.msk.bf16.vlgmr.msra.gmra.mrb[20].mxu0 %vm669_vm4, %v1152_v54 }
 0x391   : > { %733 = vadd.xlane.f32.xlu1 %v732_v56 }
 0x3dc   : > { %v777_v57 = vpop.f32.mrb[8].mxu0 }
 0x3dd   : > { %v1545_v58 = vpop.f32.mrb[9].mxu0 }
 0x3de   : > { %v780_v59 = vpop.f32.mrb[10].mxu0 }
 0x3df   : > { %v1546_v60 = vpop.f32.mrb[11].mxu0 }
 0x408   : > { %v865_v62 = vpop.xlane.xlu1 %864 }
 0x40c   : > { %v868_v61 = vpop.xlane.xlu0 %867 }
 0x410   : > { %v1008_v63 = vpop.xlane.xlu0 %1007 }
 0x412   : > { %v1011_v1 = vpop.xlane.xlu1 %1010 }
 0x418   : > { %v1148_v2 = vpop.xlane.xlu0 %1147 }
 0x41a   : > { %v1151_v3 = vpop.xlane.xlu1 %1150 }
 0x41c   : > { %v731_v4 = vpop.xlane.xlu0 %730 }
 0x41d   : > { %1715 = vrcp.f32 %v731_v4 }
 0x41e   : > { %v734_v5 = vpop.xlane.xlu1 %733 }
 0x41f   : > { %1717 = vrcp.f32 %v734_v5 }
 0x420   : > { %1719 = vrcp.f32 %v865_v62 }
 0x421   : > { %1721 = vrcp.f32 %v868_v61 }
 0x422   : > { %1723 = vrcp.f32 %v1008_v63 }
 0x423   : > { %1725 = vrcp.f32 %v1011_v1 }
 0x424   : > { %1727 = vrcp.f32 %v1148_v2 }
 0x425   : > { %1729 = vrcp.f32 %v1151_v3 }
 0x427   : > { %v1716_v6 = vpop.eup %1715 }
 0x428   : > { %v786_v7 = vmul.f32 %v1716_v6, %v731_v4 }
 0x429   : > { %v1718_v8 = vpop.eup %1717 }
 0x42a   : > { %v788_v9 = vsub.f32 2.0, %v786_v7  ;;  %v787_v10 = vmul.f32 %v1718_v8, %v734_v5  ;;  %v1720_v16 = vpop.eup %1719  ;;  %v1478_v5 = vld [vmem:[%s2489_s19] ss:$0 sm:$0xff] }
 0x42b   : > { %v1722_v17 = vpop.eup %1721  ;;  %v924_v18 = vmul.f32 %v1720_v16, %v865_v62 }
 0x42c   : > { %v790_v11 = vmul.f32 %v1716_v6, %v788_v9  ;;  %v789_v12 = vsub.f32 2.0, %v787_v10  ;;  %v925_v19 = vmul.f32 %v1722_v17, %v868_v61  ;;  %v1724_v21 = vpop.eup %1723 }
 0x42d   : > { %v926_v20 = vsub.f32 2.0, %v924_v18  ;;  %v1726_v23 = vpop.eup %1725  ;;  %v1064_v24 = vmul.f32 %v1724_v21, %v1008_v63 }
 0x42e   : > { %v792_v13 = vmul.f32 %v790_v11, %v777_v57  ;;  %v791_v14 = vmul.f32 %v1718_v8, %v789_v12  ;;  %v927_v22 = vsub.f32 2.0, %v925_v19  ;;  %v1065_v27 = vmul.f32 %v1726_v23, %v1011_v1  ;;  %v1728_v35 = vpop.eup %1727 }
 0x42f   : > { %v928_v25 = vmul.f32 %v1720_v16, %v926_v20  ;;  %v1066_v32 = vsub.f32 2.0, %v1064_v24  ;;  %v1730_v37 = vpop.eup %1729  ;;  %v1204_v38 = vmul.f32 %v1728_v35, %v1148_v2 }
 0x430   : > { %794 = vst.msk [vmem:[#allocation4] sm:$0xff] %vm669_vm4, %v792_v13  ;;  %v793_v15 = vmul.f32 %v791_v14, %v780_v59  ;;  %v929_v30 = vmul.f32 %v1722_v17, %v927_v22  ;;  %v1067_v36 = vsub.f32 2.0, %v1065_v27  ;;  %v1205_v42 = vmul.f32 %v1730_v37, %v1151_v3 }
 0x431   : > { %v1068_v39 = vmul.f32 %v1724_v21, %v1066_v32  ;;  %v1206_v48 = vsub.f32 2.0, %v1204_v38 }
 0x432   : > { %795 = vst.msk [vmem:[#allocation4 + $0x8] sm:$0xff] %vm669_vm4, %v793_v15  ;;  %v1069_v45 = vmul.f32 %v1726_v23, %v1067_v36  ;;  %v1207_v51 = vsub.f32 2.0, %v1205_v42 }
 0x433   : > { %v1208_v52 = vmul.f32 %v1728_v35, %v1206_v48 }
 0x434   : > { %v1209_v56 = vmul.f32 %v1730_v37, %v1207_v51 }
 0x453   : > { %v915_v26 = vpop.f32.mrb[12].mxu0 }
 0x454   : > { %v930_v28 = vmul.f32 %v928_v25, %v915_v26  ;;  %v1557_v29 = vpop.f32.mrb[13].mxu0 }
 0x455   : > { %v918_v31 = vpop.f32.mrb[14].mxu0 }
 0x456   : > { %v931_v33 = vmul.f32 %v929_v30, %v918_v31  ;;  %934 = vrot.lane.b32.xlu0 %v930_v28, %s1954_s10  ;;  %v1558_v34 = vpop.f32.mrb[15].mxu0 }
 0x458   : > { %936 = vrot.lane.b32.xlu1 %v931_v33, %s1954_s10 }
 0x45b   : > { %v1055_v40 = vpop.f32.mrb[16].mxu0 }
 0x45c   : > { %v1070_v43 = vmul.f32 %v1068_v39, %v1055_v40  ;;  %v1569_v44 = vpop.f32.mrb[17].mxu0 }
 0x45d   : > { %v1058_v46 = vpop.f32.mrb[18].mxu0 }
 0x45e   : > { %v1071_v49 = vmul.f32 %v1069_v45, %v1058_v46  ;;  %1074 = vrot.lane.b32.xlu1 %v1070_v43, %s1955_s23  ;;  %v1570_v50 = vpop.f32.mrb[19].mxu0 }
 0x460   : > { %1076 = vrot.lane.b32.xlu0 %v1071_v49, %s1955_s23 }
 0x463   : > { %v1195_v53 = vpop.f32.mrb[20].mxu0 }
 0x464   : > { %v1210_v54 = vmul.f32 %v1208_v52, %v1195_v53  ;;  %v1581_v55 = vpop.f32.mrb[21].mxu0 }
 0x465   : > { %v1198_v57 = vpop.f32.mrb[22].mxu0 }
 0x466   : > { %v1211_v58 = vmul.f32 %v1209_v56, %v1198_v57  ;;  %1214 = vrot.lane.b32.xlu1 %v1210_v54, %s1956_s29  ;;  %v1582_v59 = vpop.f32.mrb[23].mxu0 }
 0x468   : > { %1216 = vrot.lane.b32.xlu0 %v1211_v58, %s1956_s29 }
 0x4c8   : > { %v935_v60 = vpop.permute.xlu0 %934 }
 0x4c9   : > { %941 = vst.msk [vmem:[#allocation4] sm:$0xff] %vm940_vm6, %v935_v60 }
 0x4ca   : > { %v937_v61 = vpop.permute.xlu1 %936 }
 0x4cb   : > { %942 = vst.msk [vmem:[#allocation4 + $0x8] sm:$0xff] %vm940_vm6, %v937_v61 }
 0x4d0   : > { %v1075_v0 = vpop.permute.xlu1 %1074 }
 0x4d1   : > { %1081 = vst.msk [vmem:[#allocation4] sm:$0xff] %vm1080_vm7, %v1075_v0 }
 0x4d2   : > { %v1077_v62 = vpop.permute.xlu0 %1076 }
 0x4d3   : > { %1082 = vst.msk [vmem:[#allocation4 + $0x8] sm:$0xff] %vm1080_vm7, %v1077_v62 }
 0x4d8   : > { %v1215_v63 = vpop.permute.xlu1 %1214 }
 0x4d9   : > { %1221 = vst.msk [vmem:[#allocation4] sm:$0xff] %vm1220_vm8, %v1215_v63 }
 0x4da   : > { %v1217_v1 = vpop.permute.xlu0 %1216 }
 0x4db   : > { %1222 = vst.msk [vmem:[#allocation4 + $0x8] sm:$0xff] %vm1220_vm8, %v1217_v1 }
 0x4e0   : > { %v1223_v2 = vld [vmem:[#allocation4] sm:$0xff] }
 0x4e2   : > { %v1224_v3 = vld [vmem:[#allocation4 + $0x8] sm:$0xff] }
 0x4e3   : > { %v1225_v4 = vpack.c.bf16 %v1224_v3, %v1223_v2 }
 0x4e5   : > { %1588 = vmatmul.mubr.msk.bf16.vlgmr.msra.gmra.mrb[20].mxu1 %vm619_vm2, %v1225_v4 }
 0x5b8   : > { %v1286_v6 = vpop.f32.mrb[20].mxu1 }
 0x5b9   : > { %v1287_v7 = vadd.f32 %v1478_v5, %v1286_v6  ;;  %v1589_v8 = vpop.f32.mrb[21].mxu1 }
 0x5ba   : > { %v1289_v9 = vpop.f32.mrb[22].mxu1 }
 0x5bb   : > { %1293 = vst.msk [vmem:[%s461_s22] sm:$0xff] %vm619_vm2, %v1287_v7  ;;  %v1290_v10 = vadd.f32 %v1478_v5, %v1289_v9  ;;  %v1590_v11 = vpop.f32.mrb[23].mxu1 }
 0x5bd   : > { %1294 = vst.msk [vmem:[%s461_s22 + $0x8] sm:$0xff] %vm619_vm2, %v1290_v10 }
 0x5be   : > { %1860 = shalt.err (!%p1857_p7)
}
 0x5bf   : > { %s1861_s6 = scalar_lea.hbm %s2387_s13, 256  ;;  %s1865_s24 = scalar_lea.hbm %s2490_s0, 512 }
 0x5c0   : > { %p1862_p13 = scmp.ne.s32.totalorder %s2387_s13, %s1861_s6  ;;  %p1866_p12 = scmp.lt.u32.totalorder %s2387_s13, %s2490_s0 }
 0x5c1   : > { %p1867_p11 = scmp.lt.u32.totalorder %s1865_s24, %s1861_s6  ;;  %p1869_p2 = scmp.lt.u32.totalorder %s1861_s6, %s2387_s13 }
 0x5c2   : > { %p1863_p1 = pnand %p1862_p13, %p2491_p6 }
 0x5c3   : > { %p1868_p0 = por %p1867_p11, %p1866_p12 }
 0x5c4   : > { %p1864_p8 = pneg %p1863_p1 }
 0x5c5   : > { %p1870_p10 = por %p1869_p2, %p1868_p0 }
 0x5c7   : > { %p1871_p3 = pnand %p1870_p10, %p1864_p8 }
 0x5c9   : > { %1874 = shalt.err (!%p1871_p3)
}
 0x5ca   : > { %s1958_s19 = smov 128  }
 0x5cb   : > { %1603 = dma.vmem_to_hbm [thread:$0]  (%p2491_p6), %s2381_s12, 256, %s2387_s13, %s1296_s16, %s1958_s19, %s1958_s19, %s1954_s10  }
 0x5cc PF: > { %s2492_s22 = sld [smem:[#allocation19_spill]]  ;;  %s2493_s9 = sld [smem:[#allocation21_spill]] }
 0x5cd   : > { %p2495_p9 = scmp.ge.s32.totalorder %s1941_s18, 2 }
 0x5d2   : > { %s1326_s11 = sand.u32 1, %s2492_s22   ;;  %p2494_p4 = scmp.ne.s32.totalorder %s2493_s9, 0 }
 0x5d3   : > { %s1327_s27 = scalar_lea.sflag [#allocation7], %s1326_s11 }
 0x5d4   : > { %p1620_p5 = pnand %p2495_p9, %p2494_p4 }
 0x5d6   : > { %1916 = dma.done.wait (!%p1620_p5), %s1327_s27, 256  }
 0x5d7   : > { %1918 = vsyncadd (!%p1620_p5), %s1327_s27, 4294967040  ;;  %s30_s18 = sadd.s32 1, %s1941_s18   ;;  %s2496_s30 = sld [smem:[#allocation20_spill]] }
 0x5d8   : > { %p27_p7 = scmp.ge.s32.totalorder %s30_s18, 4   ;;  %s2497_s15 = sld [smem:[#allocation23_spill]] }
 0x5d9   : > { %s2498_s25 = sld [smem:[#allocation22_spill]]  ;;  %s2499_s13 = smov %s1925_s14 }
 0x5da   : > { %s2501_s16 = smov %s1937_s17  ;;  %29 = sbr.rel (!%p27_p7) target bundleno = 15 (0xf), region = 130 }
 0x5dd   : > { %s2500_s14 = smov %s2496_s30 }
 0x5df   : > { %s2502_s17 = smov %s2498_s25 }
 0x5e1   :  { %1332 = vsyncpa [#allocation6], 1 }
 0x5e2   :  { %1334 = vsyncpa [#allocation6 + $0x1], 1 }
 0x5e3   :  { %1335 = vsyncpa [#allocation9], 1 }
 0x5e4   :  { %1337 = vsyncpa [#allocation9 + $0x1], 1 }
 0x5e5   :  { %1338 = vsyncpa [#allocation12], 1 }
 0x5e6   :  { %1339 = vsyncpa [#allocation7], 1 }
 0x5e7   :  { %1341 = vsyncpa [#allocation7 + $0x1], 1 }

</bundles_post_ra>
